<compile_context>
chip_gen: v7x
topology: tpu7x:2x2x1
jax: 0.10.0
libtpu: 0.0.40
codegen_flags: <defaults>
</compile_context>

<pallas_src>
import functools

import jax
import jax.numpy as jnp
from jax import lax
from jax.experimental import pallas as pl
from jax.experimental.pallas import tpu as pltpu


LANE = 128


def _round_up(x, m):
    return (x + m - 1) // m * m


# ----------------------------- Pallas kernel ------------------------------ #

def _decoder_kernel(x_ref, w_res_ref, scale_ref, bias_ref, w_out_ref, b_out_ref,
                    o_ref, xa_ref, xb_ref, *, n_layers, k, pad_l, off):
    """Whole ConvDecoder forward for one batch block; activations stay in VMEM.

    x_ref:     (bb, T, Cpad)                 channel-padded input block
    w_res_ref: (2*n_layers, k*Cpad, Cpad)    flattened conv weights (tap-major)
    scale_ref: (2*n_layers, 1, Cpad)         folded eval-BN scale
    bias_ref:  (2*n_layers, 1, Cpad)         folded conv-bias + eval-BN bias
    w_out_ref: (Cpad, CoutPad)               1x1 output conv weight
    b_out_ref: (1, CoutPad)                  output conv bias
    o_ref:     (bb, T, CoutPad)
    xa_ref/xb_ref: (bb, off + T + pad_r, Cpad) f32 ping-pong scratch; rows
        [off, off+T) hold the activation, the k-1 halo rows stay zero so the
        im2col slab sees "same" zero padding for free.
    """
    bb, T, c_pad = x_ref.shape
    m = bb * T
    compute_dtype = w_res_ref.dtype

    # Zero once: only the halo rows matter (interior is always overwritten).
    xa_ref[...] = jnp.zeros_like(xa_ref)
    xb_ref[...] = jnp.zeros_like(xb_ref)
    xa_ref[:, off:off + T, :] = x_ref[...]

    def im2col(src_ref):
        # One (bb, T, Cpad) slice per tap, flattened to (bb*T, Cpad) and
        # lane-concatenated -> single (M, k*Cpad) operand for one MXU matmul.
        cols = [src_ref[:, off - pad_l + d:off - pad_l + d + T, :]
                .reshape(m, c_pad) for d in range(k)]
        return jnp.concatenate(cols, axis=-1), cols[pad_l]   # slab, center tap

    for l in range(n_layers):
        # conv1 + BN + ReLU : reads xa, writes xb
        slab, res = im2col(xa_ref)
        h = jnp.dot(slab.astype(compute_dtype), w_res_ref[2 * l],
                    preferred_element_type=jnp.float32)
        h = jnp.maximum(h * scale_ref[2 * l] + bias_ref[2 * l], 0.0)
        xb_ref[:, off:off + T, :] = h.reshape(bb, T, c_pad)

        # conv2 + BN + ReLU + residual : reads xb, writes xa
        slab, _ = im2col(xb_ref)
        y = jnp.dot(slab.astype(compute_dtype), w_res_ref[2 * l + 1],
                    preferred_element_type=jnp.float32)
        y = jnp.maximum(y * scale_ref[2 * l + 1] + bias_ref[2 * l + 1], 0.0) + res
        xa_ref[:, off:off + T, :] = y.reshape(bb, T, c_pad)

    # 1x1 output conv (no BN, no ReLU)
    xf = xa_ref[:, off:off + T, :].reshape(m, c_pad)
    out = jnp.dot(xf.astype(compute_dtype), w_out_ref[...],
                  preferred_element_type=jnp.float32) + b_out_ref[...]
    o_ref[...] = out.reshape(bb, T, o_ref.shape[-1]).astype(o_ref.dtype)


# --------------------------- Parameter plumbing ---------------------------- #

def fold_bn(conv_bias, gamma, beta, mean, var, eps=1e-5):
    """Fold conv bias + eval-mode BatchNorm1d into per-channel scale/bias."""
    s = gamma / jnp.sqrt(var + eps)
    return s, s * (conv_bias - mean) + beta


def init_params(key, hidden_channels, n_layers, kernel_size, c_out_final):
    params = {"resblocks": []}
    for _ in range(n_layers):
        blk = {}
        for name in ("conv1", "conv2"):
            key, k1, k2, k3, k4, k5, k6 = jax.random.split(key, 7)
            blk[name] = dict(
                w=jax.random.normal(
                    k1, (kernel_size, hidden_channels, hidden_channels),
                    jnp.float32) * 0.05,
                b=jax.random.normal(k2, (hidden_channels,), jnp.float32) * 0.05,
                gamma=1.0 + 0.1 * jax.random.normal(
                    k3, (hidden_channels,), jnp.float32),
                beta=0.1 * jax.random.normal(
                    k4, (hidden_channels,), jnp.float32),
                mean=0.1 * jax.random.normal(
                    k5, (hidden_channels,), jnp.float32),
                var=jnp.abs(jax.random.normal(
                    k6, (hidden_channels,), jnp.float32)) + 0.5,
            )
        params["resblocks"].append(blk)
    key, k1, k2 = jax.random.split(key, 3)
    params["out"] = dict(
        w=jax.random.normal(
            k1, (1, hidden_channels, c_out_final), jnp.float32) * 0.05,
        b=jax.random.normal(k2, (c_out_final,), jnp.float32) * 0.05,
    )
    return params


# ------------------------------ Forward pass ------------------------------- #

def conv_decoder_forward(params, x, n_mels, *, compute_dtype=jnp.float32,
                         batch_block=None):
    """x: (B, T, C) f32 -> (B, n_mels, T * upsample). Single fused pallas_call."""
    B, T, C = x.shape
    n_layers = len(params["resblocks"])
    assert n_layers >= 1
    k = params["resblocks"][0]["conv1"]["w"].shape[0]
    c_out_final = params["out"]["w"].shape[-1]

    c_pad = _round_up(max(C, LANE), LANE)
    c_out_pad = _round_up(max(c_out_final, LANE), LANE)
    pad_l = (k - 1) // 2
    pad_r = (k - 1) - pad_l
    off = _round_up(pad_l, 8)          # sublane-aligned interior offset in scratch

    # On v7x set batch_block = B // 2 so both TensorCores get a parallel step.
    bb = B if batch_block is None else batch_block
    assert B % bb == 0

    # ---- fold BN + zero-pad channels to lane width (once, on the host) ----
    ws, scs, bss = [], [], []
    for blk in params["resblocks"]:
        for name in ("conv1", "conv2"):
            p = blk[name]
            s, b = fold_bn(p["b"], p["gamma"], p["beta"], p["mean"], p["var"])
            w = jnp.pad(p["w"], ((0, 0), (0, c_pad - C), (0, c_pad - C)))
            ws.append(w.reshape(k * c_pad, c_pad))       # tap-major rows
            scs.append(jnp.pad(s, (0, c_pad - C)))
            bss.append(jnp.pad(b, (0, c_pad - C)))
    w_res = jnp.stack(ws).astype(compute_dtype)          # (2L, k*Cpad, Cpad)
    scale = jnp.stack(scs)[:, None, :].astype(jnp.float32)
    bias = jnp.stack(bss)[:, None, :].astype(jnp.float32)

    w_out = jnp.pad(params["out"]["w"][0],
                    ((0, c_pad - C), (0, c_out_pad - c_out_final))
                    ).astype(compute_dtype)              # (Cpad, CoutPad)
    b_out = jnp.pad(params["out"]["b"],
                    (0, c_out_pad - c_out_final))[None, :].astype(jnp.float32)

    x_p = jnp.pad(x, ((0, 0), (0, 0), (0, c_pad - C))).astype(jnp.float32)

    kernel = functools.partial(_decoder_kernel, n_layers=n_layers, k=k,
                               pad_l=pad_l, off=off)

    itemsize = jnp.dtype(compute_dtype).itemsize
    flops = (2 * B * T * (k * c_pad) * c_pad * (2 * n_layers)
             + 2 * B * T * c_pad * c_out_pad)
    bytes_accessed = (x_p.size * 4
                      + (w_res.size + w_out.size) * itemsize
                      + (scale.size + bias.size + b_out.size) * 4
                      + B * T * c_out_pad * 4)

    y = pl.pallas_call(
        kernel,
        out_shape=jax.ShapeDtypeStruct((B, T, c_out_pad), jnp.float32),
        grid=(B // bb,),
        in_specs=[
            pl.BlockSpec((bb, T, c_pad), lambda i: (i, 0, 0)),
            pl.BlockSpec((2 * n_layers, k * c_pad, c_pad), lambda i: (0, 0, 0)),
            pl.BlockSpec((2 * n_layers, 1, c_pad), lambda i: (0, 0, 0)),
            pl.BlockSpec((2 * n_layers, 1, c_pad), lambda i: (0, 0, 0)),
            pl.BlockSpec((c_pad, c_out_pad), lambda i: (0, 0)),
            pl.BlockSpec((1, c_out_pad), lambda i: (0, 0)),
        ],
        out_specs=pl.BlockSpec((bb, T, c_out_pad), lambda i: (i, 0, 0)),
        scratch_shapes=[pltpu.VMEM((bb, off + T + pad_r, c_pad),
                                   jnp.float32)] * 2,
        compiler_params=pltpu.CompilerParams(
            dimension_semantics=("parallel",)),
        cost_estimate=pl.CostEstimate(
            flops=flops, transcendentals=0, bytes_accessed=bytes_accessed),
    )(x_p, w_res, scale, bias, w_out, b_out)

    y = y[..., :c_out_final]                   # drop channel lane-padding
    up = c_out_final // n_mels
    y = y.reshape(B, T * up, n_mels)           # (B, T*up, n_mels)
    return jnp.transpose(y, (0, 2, 1))         # (B, n_mels, T*up)


# --------------------------- Pure-JAX reference ----------------------------- #

def conv_decoder_reference(params, x, n_mels):
    def conv1d(x, w, b):
        y = lax.conv_general_dilated(
            x, w, window_strides=(1,), padding="SAME",
            dimension_numbers=("NWC", "WIO", "NWC"))
        return y + b

    def bn(x, p):
        s = p["gamma"] / jnp.sqrt(p["var"] + 1e-5)
        return s * (x - p["mean"]) + p["beta"]

    for blk in params["resblocks"]:
        res = x
        h = jax.nn.relu(bn(conv1d(x, blk["conv1"]["w"], blk["conv1"]["b"]),
                           blk["conv1"]))
        x = jax.nn.relu(bn(conv1d(h, blk["conv2"]["w"], blk["conv2"]["b"]),
                           blk["conv2"])) + res
    y = conv1d(x, params["out"]["w"], params["out"]["b"])
    B, T, c_out = y.shape
    y = y.reshape(B, T * (c_out // n_mels), n_mels)
    return jnp.transpose(y, (0, 2, 1))


# ----------------------------------- Main ----------------------------------- #

if __name__ == "__main__":
    # Synthetic config (mirrors cfg['model']['decoder'] / cfg['data']['audio'])
    n_conv_layers = 2
    conv_kernel_size = 3
    n_mels = 8
    upsample = 2          # get_upsample(cfg)
    hidden_channels = 32
    B, T = 2, 16

    key = jax.random.PRNGKey(0)
    key, kx, kp = jax.random.split(key, 3)
    x = jax.random.normal(kx, (B, T, hidden_channels), jnp.float32)

    params = init_params(kp, hidden_channels, n_conv_layers,
                         conv_kernel_size, n_mels * upsample)

    out = conv_decoder_forward(params, x, n_mels)
    out = jax.block_until_ready(out)

    ref = conv_decoder_reference(params, x, n_mels)
    assert out.shape == (B, n_mels, T * upsample), out.shape
    assert jnp.allclose(out, ref, atol=1e-4, rtol=1e-4), (
        float(jnp.max(jnp.abs(out - ref))))

    print("KERNEL_OK")
</pallas_src>

<mosaic_0001>
module attributes {stable_mosaic.version = 11 : i64} {
  func.func @_decoder_kernel(%arg0: i32, %arg1: memref<2x16x128xf32, #tpu.memory_space<vmem>>, %arg2: memref<4x384x128xf32, #tpu.memory_space<vmem>>, %arg3: memref<4x1x128xf32, #tpu.memory_space<vmem>>, %arg4: memref<4x1x128xf32, #tpu.memory_space<vmem>>, %arg5: memref<128x128xf32, #tpu.memory_space<vmem>>, %arg6: memref<1x128xf32, #tpu.memory_space<vmem>>, %arg7: memref<2x16x128xf32, #tpu.memory_space<vmem>>, %arg8: memref<2x25x128xf32, #tpu.memory_space<vmem>>, %arg9: memref<2x25x128xf32, #tpu.memory_space<vmem>>) attributes {dimension_semantics = [#tpu.dimension_semantics<parallel>], iteration_bounds = array<i64: 1>, scalar_prefetch = 0 : i64, scratch_operands = 2 : i64, tpu.core_type = #tpu.core_type<tc>, window_params = [{transform_indices = @transform_0, window_bounds = array<i64: 2, 16, 128>}, {pipeline_mode = #tpu.pipeline_mode<synchronous>, transform_indices = @transform_1, window_bounds = array<i64: 4, 384, 128>}, {pipeline_mode = #tpu.pipeline_mode<synchronous>, transform_indices = @transform_2, window_bounds = array<i64: 4, 1, 128>}, {pipeline_mode = #tpu.pipeline_mode<synchronous>, transform_indices = @transform_3, window_bounds = array<i64: 4, 1, 128>}, {pipeline_mode = #tpu.pipeline_mode<synchronous>, transform_indices = @transform_4, window_bounds = array<i64: 128, 128>}, {pipeline_mode = #tpu.pipeline_mode<synchronous>, transform_indices = @transform_5, window_bounds = array<i64: 1, 128>}, {transform_indices = @transform_6, window_bounds = array<i64: 2, 16, 128>}]} {
    %cst = arith.constant 0.000000e+00 : f32
    %0 = vector.broadcast %cst : f32 to vector<2x25x128xf32>
    %c0 = arith.constant 0 : index
    %c0_0 = arith.constant 0 : index
    %c0_1 = arith.constant 0 : index
    %1 = vector.load %arg8[%c0, %c0_0, %c0_1] : memref<2x25x128xf32, #tpu.memory_space<vmem>>, vector<2x25x128xf32>
    tpu.vector_store %arg8[%c0, %c0_0, %c0_1], %0 {strides = array<i32>} : memref<2x25x128xf32, #tpu.memory_space<vmem>>, vector<2x25x128xf32>,
    %cst_2 = arith.constant 0.000000e+00 : f32
    %2 = vector.broadcast %cst_2 : f32 to vector<2x25x128xf32>
    %c0_3 = arith.constant 0 : index
    %c0_4 = arith.constant 0 : index
    %c0_5 = arith.constant 0 : index
    %3 = vector.load %arg9[%c0_3, %c0_4, %c0_5] : memref<2x25x128xf32, #tpu.memory_space<vmem>>, vector<2x25x128xf32>
    tpu.vector_store %arg9[%c0_3, %c0_4, %c0_5], %2 {strides = array<i32>} : memref<2x25x128xf32, #tpu.memory_space<vmem>>, vector<2x25x128xf32>,
    %c0_6 = arith.constant 0 : index
    %c0_7 = arith.constant 0 : index
    %c0_8 = arith.constant 0 : index
    %4 = vector.load %arg1[%c0_6, %c0_7, %c0_8] : memref<2x16x128xf32, #tpu.memory_space<vmem>>, vector<2x16x128xf32>
    %c0_9 = arith.constant 0 : index
    %c8 = arith.constant 8 : index
    %c0_10 = arith.constant 0 : index
    %5 = vector.load %arg8[%c0_9, %c8, %c0_10] : memref<2x25x128xf32, #tpu.memory_space<vmem>>, vector<2x16x128xf32>
    tpu.vector_store %arg8[%c0_9, %c8, %c0_10], %4 {strides = array<i32>} : memref<2x25x128xf32, #tpu.memory_space<vmem>>, vector<2x16x128xf32>,
    %c0_11 = arith.constant 0 : index
    %c7 = arith.constant 7 : index
    %c0_12 = arith.constant 0 : index
    %6 = vector.load %arg8[%c0_11, %c7, %c0_12] : memref<2x25x128xf32, #tpu.memory_space<vmem>>, vector<2x16x128xf32>
    %7 = vector.shape_cast %6 : vector<2x16x128xf32> to vector<32x128xf32>
    %c0_13 = arith.constant 0 : index
    %c8_14 = arith.constant 8 : index
    %c0_15 = arith.constant 0 : index
    %8 = vector.load %arg8[%c0_13, %c8_14, %c0_15] : memref<2x25x128xf32, #tpu.memory_space<vmem>>, vector<2x16x128xf32>
    %9 = vector.shape_cast %8 : vector<2x16x128xf32> to vector<32x128xf32>
    %c0_16 = arith.constant 0 : index
    %c9 = arith.constant 9 : index
    %c0_17 = arith.constant 0 : index
    %10 = vector.load %arg8[%c0_16, %c9, %c0_17] : memref<2x25x128xf32, #tpu.memory_space<vmem>>, vector<2x16x128xf32>
    %11 = vector.shape_cast %10 : vector<2x16x128xf32> to vector<32x128xf32>
    %12 = tpu.concatenate %7, %9, %11 in 1 : vector<32x128xf32>, vector<32x128xf32>, vector<32x128xf32> -> vector<32x384xf32>
    %c0_18 = arith.constant 0 : index
    %c0_19 = arith.constant 0 : index
    %c0_20 = arith.constant 0 : index
    %13 = vector.load %arg2[%c0_18, %c0_19, %c0_20] : memref<4x384x128xf32, #tpu.memory_space<vmem>>, vector<1x384x128xf32>
    %14 = vector.shape_cast %13 : vector<1x384x128xf32> to vector<384x128xf32>
    %cst_21 = arith.constant dense<0.000000e+00> : vector<32x128xf32>
    %15 = tpu.matmul %12, %14, %cst_21 {dimension_numbers = #tpu.dot_dimension_numbers<[1], [0], [0], [1], [0, 0, 1, 1], [], []>} : vector<32x384xf32>, vector<384x128xf32>, vector<32x128xf32> -> vector<32x128xf32>
    %c0_22 = arith.constant 0 : index
    %c0_23 = arith.constant 0 : index
    %c0_24 = arith.constant 0 : index
    %16 = vector.load %arg3[%c0_22, %c0_23, %c0_24] : memref<4x1x128xf32, #tpu.memory_space<vmem>>, vector<1x1x128xf32>
    %17 = vector.shape_cast %16 : vector<1x1x128xf32> to vector<1x128xf32>
    %18 = vector.broadcast %17 : vector<1x128xf32> to vector<32x128xf32>
    %19 = arith.mulf %15, %18 : vector<32x128xf32>
    %c0_25 = arith.constant 0 : index
    %c0_26 = arith.constant 0 : index
    %c0_27 = arith.constant 0 : index
    %20 = vector.load %arg4[%c0_25, %c0_26, %c0_27] : memref<4x1x128xf32, #tpu.memory_space<vmem>>, vector<1x1x128xf32>
    %21 = vector.shape_cast %20 : vector<1x1x128xf32> to vector<1x128xf32>
    %22 = vector.broadcast %21 : vector<1x128xf32> to vector<32x128xf32>
    %23 = arith.addf %19, %22 : vector<32x128xf32>
    %cst_28 = arith.constant 0.000000e+00 : f32
    %24 = vector.broadcast %cst_28 : f32 to vector<32x128xf32>
    %25 = arith.maximumf %23, %24 : vector<32x128xf32>
    %26 = vector.shape_cast %25 : vector<32x128xf32> to vector<2x16x128xf32>
    %c0_29 = arith.constant 0 : index
    %c8_30 = arith.constant 8 : index
    %c0_31 = arith.constant 0 : index
    %27 = vector.load %arg9[%c0_29, %c8_30, %c0_31] : memref<2x25x128xf32, #tpu.memory_space<vmem>>, vector<2x16x128xf32>
    tpu.vector_store %arg9[%c0_29, %c8_30, %c0_31], %26 {strides = array<i32>} : memref<2x25x128xf32, #tpu.memory_space<vmem>>, vector<2x16x128xf32>,
    %c0_32 = arith.constant 0 : index
    %c7_33 = arith.constant 7 : index
    %c0_34 = arith.constant 0 : index
    %28 = vector.load %arg9[%c0_32, %c7_33, %c0_34] : memref<2x25x128xf32, #tpu.memory_space<vmem>>, vector<2x16x128xf32>
    %29 = vector.shape_cast %28 : vector<2x16x128xf32> to vector<32x128xf32>
    %c0_35 = arith.constant 0 : index
    %c8_36 = arith.constant 8 : index
    %c0_37 = arith.constant 0 : index
    %30 = vector.load %arg9[%c0_35, %c8_36, %c0_37] : memref<2x25x128xf32, #tpu.memory_space<vmem>>, vector<2x16x128xf32>
    %31 = vector.shape_cast %30 : vector<2x16x128xf32> to vector<32x128xf32>
    %c0_38 = arith.constant 0 : index
    %c9_39 = arith.constant 9 : index
    %c0_40 = arith.constant 0 : index
    %32 = vector.load %arg9[%c0_38, %c9_39, %c0_40] : memref<2x25x128xf32, #tpu.memory_space<vmem>>, vector<2x16x128xf32>
    %33 = vector.shape_cast %32 : vector<2x16x128xf32> to vector<32x128xf32>
    %34 = tpu.concatenate %29, %31, %33 in 1 : vector<32x128xf32>, vector<32x128xf32>, vector<32x128xf32> -> vector<32x384xf32>
    %c1 = arith.constant 1 : index
    %c0_41 = arith.constant 0 : index
    %c0_42 = arith.constant 0 : index
    %35 = vector.load %arg2[%c1, %c0_41, %c0_42] : memref<4x384x128xf32, #tpu.memory_space<vmem>>, vector<1x384x128xf32>
    %36 = vector.shape_cast %35 : vector<1x384x128xf32> to vector<384x128xf32>
    %cst_43 = arith.constant dense<0.000000e+00> : vector<32x128xf32>
    %37 = tpu.matmul %34, %36, %cst_43 {dimension_numbers = #tpu.dot_dimension_numbers<[1], [0], [0], [1], [0, 0, 1, 1], [], []>} : vector<32x384xf32>, vector<384x128xf32>, vector<32x128xf32> -> vector<32x128xf32>
    %c1_44 = arith.constant 1 : index
    %c0_45 = arith.constant 0 : index
    %c0_46 = arith.constant 0 : index
    %38 = vector.load %arg3[%c1_44, %c0_45, %c0_46] : memref<4x1x128xf32, #tpu.memory_space<vmem>>, vector<1x1x128xf32>
    %39 = vector.shape_cast %38 : vector<1x1x128xf32> to vector<1x128xf32>
    %40 = vector.broadcast %39 : vector<1x128xf32> to vector<32x128xf32>
    %41 = arith.mulf %37, %40 : vector<32x128xf32>
    %c1_47 = arith.constant 1 : index
    %c0_48 = arith.constant 0 : index
    %c0_49 = arith.constant 0 : index
    %42 = vector.load %arg4[%c1_47, %c0_48, %c0_49] : memref<4x1x128xf32, #tpu.memory_space<vmem>>, vector<1x1x128xf32>
    %43 = vector.shape_cast %42 : vector<1x1x128xf32> to vector<1x128xf32>
    %44 = vector.broadcast %43 : vector<1x128xf32> to vector<32x128xf32>
    %45 = arith.addf %41, %44 : vector<32x128xf32>
    %cst_50 = arith.constant 0.000000e+00 : f32
    %46 = vector.broadcast %cst_50 : f32 to vector<32x128xf32>
    %47 = arith.maximumf %45, %46 : vector<32x128xf32>
    %48 = arith.addf %47, %9 : vector<32x128xf32>
    %49 = vector.shape_cast %48 : vector<32x128xf32> to vector<2x16x128xf32>
    %c0_51 = arith.constant 0 : index
    %c8_52 = arith.constant 8 : index
    %c0_53 = arith.constant 0 : index
    %50 = vector.load %arg8[%c0_51, %c8_52, %c0_53] : memref<2x25x128xf32, #tpu.memory_space<vmem>>, vector<2x16x128xf32>
    tpu.vector_store %arg8[%c0_51, %c8_52, %c0_53], %49 {strides = array<i32>} : memref<2x25x128xf32, #tpu.memory_space<vmem>>, vector<2x16x128xf32>,
    %c0_54 = arith.constant 0 : index
    %c7_55 = arith.constant 7 : index
    %c0_56 = arith.constant 0 : index
    %51 = vector.load %arg8[%c0_54, %c7_55, %c0_56] : memref<2x25x128xf32, #tpu.memory_space<vmem>>, vector<2x16x128xf32>
    %52 = vector.shape_cast %51 : vector<2x16x128xf32> to vector<32x128xf32>
    %c0_57 = arith.constant 0 : index
    %c8_58 = arith.constant 8 : index
    %c0_59 = arith.constant 0 : index
    %53 = vector.load %arg8[%c0_57, %c8_58, %c0_59] : memref<2x25x128xf32, #tpu.memory_space<vmem>>, vector<2x16x128xf32>
    %54 = vector.shape_cast %53 : vector<2x16x128xf32> to vector<32x128xf32>
    %c0_60 = arith.constant 0 : index
    %c9_61 = arith.constant 9 : index
    %c0_62 = arith.constant 0 : index
    %55 = vector.load %arg8[%c0_60, %c9_61, %c0_62] : memref<2x25x128xf32, #tpu.memory_space<vmem>>, vector<2x16x128xf32>
    %56 = vector.shape_cast %55 : vector<2x16x128xf32> to vector<32x128xf32>
    %57 = tpu.concatenate %52, %54, %56 in 1 : vector<32x128xf32>, vector<32x128xf32>, vector<32x128xf32> -> vector<32x384xf32>
    %c2 = arith.constant 2 : index
    %c0_63 = arith.constant 0 : index
    %c0_64 = arith.constant 0 : index
    %58 = vector.load %arg2[%c2, %c0_63, %c0_64] : memref<4x384x128xf32, #tpu.memory_space<vmem>>, vector<1x384x128xf32>
    %59 = vector.shape_cast %58 : vector<1x384x128xf32> to vector<384x128xf32>
    %cst_65 = arith.constant dense<0.000000e+00> : vector<32x128xf32>
    %60 = tpu.matmul %57, %59, %cst_65 {dimension_numbers = #tpu.dot_dimension_numbers<[1], [0], [0], [1], [0, 0, 1, 1], [], []>} : vector<32x384xf32>, vector<384x128xf32>, vector<32x128xf32> -> vector<32x128xf32>
    %c2_66 = arith.constant 2 : index
    %c0_67 = arith.constant 0 : index
    %c0_68 = arith.constant 0 : index
    %61 = vector.load %arg3[%c2_66, %c0_67, %c0_68] : memref<4x1x128xf32, #tpu.memory_space<vmem>>, vector<1x1x128xf32>
    %62 = vector.shape_cast %61 : vector<1x1x128xf32> to vector<1x128xf32>
    %63 = vector.broadcast %62 : vector<1x128xf32> to vector<32x128xf32>
    %64 = arith.mulf %60, %63 : vector<32x128xf32>
    %c2_69 = arith.constant 2 : index
    %c0_70 = arith.constant 0 : index
    %c0_71 = arith.constant 0 : index
    %65 = vector.load %arg4[%c2_69, %c0_70, %c0_71] : memref<4x1x128xf32, #tpu.memory_space<vmem>>, vector<1x1x128xf32>
    %66 = vector.shape_cast %65 : vector<1x1x128xf32> to vector<1x128xf32>
    %67 = vector.broadcast %66 : vector<1x128xf32> to vector<32x128xf32>
    %68 = arith.addf %64, %67 : vector<32x128xf32>
    %cst_72 = arith.constant 0.000000e+00 : f32
    %69 = vector.broadcast %cst_72 : f32 to vector<32x128xf32>
    %70 = arith.maximumf %68, %69 : vector<32x128xf32>
    %71 = vector.shape_cast %70 : vector<32x128xf32> to vector<2x16x128xf32>
    %c0_73 = arith.constant 0 : index
    %c8_74 = arith.constant 8 : index
    %c0_75 = arith.constant 0 : index
    %72 = vector.load %arg9[%c0_73, %c8_74, %c0_75] : memref<2x25x128xf32, #tpu.memory_space<vmem>>, vector<2x16x128xf32>
    tpu.vector_store %arg9[%c0_73, %c8_74, %c0_75], %71 {strides = array<i32>} : memref<2x25x128xf32, #tpu.memory_space<vmem>>, vector<2x16x128xf32>,
    %c0_76 = arith.constant 0 : index
    %c7_77 = arith.constant 7 : index
    %c0_78 = arith.constant 0 : index
    %73 = vector.load %arg9[%c0_76, %c7_77, %c0_78] : memref<2x25x128xf32, #tpu.memory_space<vmem>>, vector<2x16x128xf32>
    %74 = vector.shape_cast %73 : vector<2x16x128xf32> to vector<32x128xf32>
    %c0_79 = arith.constant 0 : index
    %c8_80 = arith.constant 8 : index
    %c0_81 = arith.constant 0 : index
    %75 = vector.load %arg9[%c0_79, %c8_80, %c0_81] : memref<2x25x128xf32, #tpu.memory_space<vmem>>, vector<2x16x128xf32>
    %76 = vector.shape_cast %75 : vector<2x16x128xf32> to vector<32x128xf32>
    %c0_82 = arith.constant 0 : index
    %c9_83 = arith.constant 9 : index
    %c0_84 = arith.constant 0 : index
    %77 = vector.load %arg9[%c0_82, %c9_83, %c0_84] : memref<2x25x128xf32, #tpu.memory_space<vmem>>, vector<2x16x128xf32>
    %78 = vector.shape_cast %77 : vector<2x16x128xf32> to vector<32x128xf32>
    %79 = tpu.concatenate %74, %76, %78 in 1 : vector<32x128xf32>, vector<32x128xf32>, vector<32x128xf32> -> vector<32x384xf32>
    %c3 = arith.constant 3 : index
    %c0_85 = arith.constant 0 : index
    %c0_86 = arith.constant 0 : index
    %80 = vector.load %arg2[%c3, %c0_85, %c0_86] : memref<4x384x128xf32, #tpu.memory_space<vmem>>, vector<1x384x128xf32>
    %81 = vector.shape_cast %80 : vector<1x384x128xf32> to vector<384x128xf32>
    %cst_87 = arith.constant dense<0.000000e+00> : vector<32x128xf32>
    %82 = tpu.matmul %79, %81, %cst_87 {dimension_numbers = #tpu.dot_dimension_numbers<[1], [0], [0], [1], [0, 0, 1, 1], [], []>} : vector<32x384xf32>, vector<384x128xf32>, vector<32x128xf32> -> vector<32x128xf32>
    %c3_88 = arith.constant 3 : index
    %c0_89 = arith.constant 0 : index
    %c0_90 = arith.constant 0 : index
    %83 = vector.load %arg3[%c3_88, %c0_89, %c0_90] : memref<4x1x128xf32, #tpu.memory_space<vmem>>, vector<1x1x128xf32>
    %84 = vector.shape_cast %83 : vector<1x1x128xf32> to vector<1x128xf32>
    %85 = vector.broadcast %84 : vector<1x128xf32> to vector<32x128xf32>
    %86 = arith.mulf %82, %85 : vector<32x128xf32>
    %c3_91 = arith.constant 3 : index
    %c0_92 = arith.constant 0 : index
    %c0_93 = arith.constant 0 : index
    %87 = vector.load %arg4[%c3_91, %c0_92, %c0_93] : memref<4x1x128xf32, #tpu.memory_space<vmem>>, vector<1x1x128xf32>
    %88 = vector.shape_cast %87 : vector<1x1x128xf32> to vector<1x128xf32>
    %89 = vector.broadcast %88 : vector<1x128xf32> to vector<32x128xf32>
    %90 = arith.addf %86, %89 : vector<32x128xf32>
    %cst_94 = arith.constant 0.000000e+00 : f32
    %91 = vector.broadcast %cst_94 : f32 to vector<32x128xf32>
    %92 = arith.maximumf %90, %91 : vector<32x128xf32>
    %93 = arith.addf %92, %54 : vector<32x128xf32>
    %94 = vector.shape_cast %93 : vector<32x128xf32> to vector<2x16x128xf32>
    %c0_95 = arith.constant 0 : index
    %c8_96 = arith.constant 8 : index
    %c0_97 = arith.constant 0 : index
    %95 = vector.load %arg8[%c0_95, %c8_96, %c0_97] : memref<2x25x128xf32, #tpu.memory_space<vmem>>, vector<2x16x128xf32>
    tpu.vector_store %arg8[%c0_95, %c8_96, %c0_97], %94 {strides = array<i32>} : memref<2x25x128xf32, #tpu.memory_space<vmem>>, vector<2x16x128xf32>,
    %c0_98 = arith.constant 0 : index
    %c8_99 = arith.constant 8 : index
    %c0_100 = arith.constant 0 : index
    %96 = vector.load %arg8[%c0_98, %c8_99, %c0_100] : memref<2x25x128xf32, #tpu.memory_space<vmem>>, vector<2x16x128xf32>
    %97 = vector.shape_cast %96 : vector<2x16x128xf32> to vector<32x128xf32>
    %c0_101 = arith.constant 0 : index
    %c0_102 = arith.constant 0 : index
    %98 = vector.load %arg5[%c0_101, %c0_102] : memref<128x128xf32, #tpu.memory_space<vmem>>, vector<128x128xf32>
    %cst_103 = arith.constant dense<0.000000e+00> : vector<32x128xf32>
    %99 = tpu.matmul %97, %98, %cst_103 {dimension_numbers = #tpu.dot_dimension_numbers<[1], [0], [0], [1], [0, 0, 1, 1], [], []>} : vector<32x128xf32>, vector<128x128xf32>, vector<32x128xf32> -> vector<32x128xf32>
    %c0_104 = arith.constant 0 : index
    %c0_105 = arith.constant 0 : index
    %100 = vector.load %arg6[%c0_104, %c0_105] : memref<1x128xf32, #tpu.memory_space<vmem>>, vector<1x128xf32>
    %101 = vector.broadcast %100 : vector<1x128xf32> to vector<32x128xf32>
    %102 = arith.addf %99, %101 : vector<32x128xf32>
    %103 = vector.shape_cast %102 : vector<32x128xf32> to vector<2x16x128xf32>
    %c0_106 = arith.constant 0 : index
    %c0_107 = arith.constant 0 : index
    %c0_108 = arith.constant 0 : index
    %104 = vector.load %arg7[%c0_106, %c0_107, %c0_108] : memref<2x16x128xf32, #tpu.memory_space<vmem>>, vector<2x16x128xf32>
    tpu.vector_store %arg7[%c0_106, %c0_107, %c0_108], %103 {strides = array<i32>} : memref<2x16x128xf32, #tpu.memory_space<vmem>>, vector<2x16x128xf32>,
    return
  }
  func.func @transform_0(%arg0: i32) -> (i32, i32, i32) {
    %c0_i32 = arith.constant 0 : i32
    %c0_i32_0 = arith.constant 0 : i32
    %c0_i32_1 = arith.constant 0 : i32
    return %arg0, %c0_i32, %c0_i32_0 : i32, i32, i32
  }
  func.func @transform_1(%arg0: i32) -> (i32, i32, i32) {
    %c0_i32 = arith.constant 0 : i32
    %c0_i32_0 = arith.constant 0 : i32
    %c0_i32_1 = arith.constant 0 : i32
    %c0_i32_2 = arith.constant 0 : i32
    return %c0_i32, %c0_i32_0, %c0_i32_1 : i32, i32, i32
  }
  func.func @transform_2(%arg0: i32) -> (i32, i32, i32) {
    %c0_i32 = arith.constant 0 : i32
    %c0_i32_0 = arith.constant 0 : i32
    %c0_i32_1 = arith.constant 0 : i32
    %c0_i32_2 = arith.constant 0 : i32
    return %c0_i32, %c0_i32_0, %c0_i32_1 : i32, i32, i32
  }
  func.func @transform_3(%arg0: i32) -> (i32, i32, i32) {
    %c0_i32 = arith.constant 0 : i32
    %c0_i32_0 = arith.constant 0 : i32
    %c0_i32_1 = arith.constant 0 : i32
    %c0_i32_2 = arith.constant 0 : i32
    return %c0_i32, %c0_i32_0, %c0_i32_1 : i32, i32, i32
  }
  func.func @transform_4(%arg0: i32) -> (i32, i32) {
    %c0_i32 = arith.constant 0 : i32
    %c0_i32_0 = arith.constant 0 : i32
    %c0_i32_1 = arith.constant 0 : i32
    return %c0_i32, %c0_i32_0 : i32, i32
  }
  func.func @transform_5(%arg0: i32) -> (i32, i32) {
    %c0_i32 = arith.constant 0 : i32
    %c0_i32_0 = arith.constant 0 : i32
    %c0_i32_1 = arith.constant 0 : i32
    return %c0_i32, %c0_i32_0 : i32, i32
  }
  func.func @transform_6(%arg0: i32) -> (i32, i32, i32) {
    %c0_i32 = arith.constant 0 : i32
    %c0_i32_0 = arith.constant 0 : i32
    %c0_i32_1 = arith.constant 0 : i32
    return %arg0, %c0_i32, %c0_i32_0 : i32, i32, i32
  }
}

</mosaic_0001>

<bundles_post_ra>
// kernel: tpu_custom_call.1
= control target key start
LH: loop header
LB: loop body
LE: loop exit
PB: predicated region body
PF: predicated region fallthrough
CT: control target
= control target key end

     0   :  { %11 = vsyncpa [#allocation5], 0  ;;  %s2350_s0 = inlined_call_operand.hbm [shape: f32[2,16,128], index: 0, kind: input, shape index: {}]   ;;  %s2351_s1 = inlined_call_operand.hbm [shape: f32[4,384,128], index: 1, kind: input, shape index: {}]   ;;  %s2352_s2 = inlined_call_operand.vmem [shape: f32[4,1,128], index: 2, kind: input, shape index: {}]   ;;  %s2353_s3 = inlined_call_operand.vmem [shape: f32[4,1,128], index: 3, kind: input, shape index: {}]   ;;  %s2354_s4 = inlined_call_operand.hbm [shape: f32[128,128], index: 4, kind: input, shape index: {}]   ;;  %s2355_s5 = inlined_call_operand.vmem [shape: f32[1,128], index: 5, kind: input, shape index: {}]   ;;  %s2356_s6 = inlined_call_operand.hbm [shape: f32[2,16,128], index: 6, kind: output, shape index: {}]  }
   0x1   :  { %12 = vsyncpa [#allocation8], 0 }
   0x2   :  { %13 = vsyncpa [#allocation6], 0  ;;  %s2166_s21 = smov [#allocation7]   ;;  %s2167_s23 = smov [#allocation4]  }
   0x3   :  { %s31_s22 = sshll.u32 %s2166_s21, 4  ;;  %s19_s24 = sshll.u32 %s2167_s23, 4  ;;  %s32_s22 = int_to_ptr.vmem [resolvable:$true] %s31_s22  ;;  %s2208_s24 = int_to_ptr.vmem [resolvable:$true] %s19_s24 }
   0x4   :  { %s2072_s27 = scalar_lea.hbm %s2351_s1, 24576 }
   0x5   :  { %p2073_p0 = scmp.ne.s32.totalorder %s2351_s1, %s2072_s27  ;;  %p2076_p1 = scmp.lt.u32.totalorder %s2072_s27, %s2351_s1 }
   0x7   :  { %p2078_p2 = pnand %p2076_p1, %p2073_p0 }
   0x9   :  { %2081 = shalt.err (!%p2078_p2)
}
   0xa   :  { %s2082_s8 = scalar_lea.vmem %s32_s22, 24576  ;;  %p2087_p4 = scmp.lt.s32.totalorder %s32_s22, %s32_s22 }
   0xb   :  { %p2083_p3 = scmp.ne.s32.totalorder %s32_s22, %s2082_s8  ;;  %p2088_p5 = scmp.lt.s32.totalorder %s2082_s8, %s2082_s8 }
   0xd   :  { %p2089_p6 = por %p2088_p5, %p2087_p4 }
   0xf   :  { %p2090_p7 = pnand %p2089_p6, %p2083_p3 }
  0x11   :  { %2093 = shalt.err (!%p2090_p7)
}
  0x12   :  { %s2168_s9 = smov 128   ;;  %s2169_s10 = smov 8  }
  0x13   :  { %37 = dma.hbm_to_vmem [thread:$0]  %s2351_s1, 24576, %s32_s22, [#allocation8], %s2168_s9, %s2168_s9, %s2169_s10  }
  0x14   :  { %s2094_s15 = scalar_lea.hbm %s2350_s0, 512 }
  0x15   :  { %p2095_p8 = scmp.ne.s32.totalorder %s2350_s0, %s2094_s15  ;;  %p2098_p9 = scmp.lt.u32.totalorder %s2094_s15, %s2350_s0 }
  0x17   :  { %p2100_p10 = pnand %p2098_p9, %p2095_p8 }
  0x19   :  { %2103 = shalt.err (!%p2100_p10)
}
  0x1a   :  { %s2104_s20 = scalar_lea.vmem %s2208_s24, 512  ;;  %p2109_p12 = scmp.lt.s32.totalorder %s2208_s24, %s2208_s24 }
  0x1b   :  { %p2105_p11 = scmp.ne.s32.totalorder %s2208_s24, %s2104_s20  ;;  %p2110_p13 = scmp.lt.s32.totalorder %s2104_s20, %s2104_s20 }
  0x1d   :  { %p2111_p0 = por %p2110_p13, %p2109_p12 }
  0x1f   :  { %p2112_p1 = pnand %p2111_p0, %p2105_p11 }
  0x21   :  { %2115 = shalt.err (!%p2112_p1)
}
  0x22   :  { %25 = dma.hbm_to_vmem [thread:$0]  %s2350_s0, 512, %s2208_s24, [#allocation5], %s2168_s9, %s2168_s9, %s2169_s10  }
  0x23   :  { %s2170_s22 = smov [#allocation9]   ;;  %s2116_s27 = scalar_lea.hbm %s2354_s4, 2048 }
  0x24   :  { %s47_s23 = sshll.u32 %s2170_s22, 4  ;;  %p2117_p2 = scmp.ne.s32.totalorder %s2354_s4, %s2116_s27  ;;  %s48_s23 = int_to_ptr.vmem [resolvable:$true] %s47_s23 }
  0x25   :  { %p2120_p3 = scmp.lt.u32.totalorder %s2116_s27, %s2354_s4 }
  0x27   :  { %p2122_p4 = pnand %p2120_p3, %p2117_p2 }
  0x29   :  { %2125 = shalt.err (!%p2122_p4)
}
  0x2a   :  { %s2126_s8 = scalar_lea.vmem %s48_s23, 2048  ;;  %p2131_p6 = scmp.lt.s32.totalorder %s48_s23, %s48_s23 }
  0x2b   :  { %p2127_p5 = scmp.ne.s32.totalorder %s48_s23, %s2126_s8  ;;  %p2132_p7 = scmp.lt.s32.totalorder %s2126_s8, %s2126_s8 }
  0x2d   :  { %p2133_p8 = por %p2132_p7, %p2131_p6 }
  0x2f   :  { %p2134_p9 = pnand %p2133_p8, %p2127_p5 }
  0x31   :  { %2137 = shalt.err (!%p2134_p9)
}
  0x32   :  { %53 = dma.hbm_to_vmem [thread:$0]  %s2354_s4, 2048, %s48_s23, [#allocation8], %s2168_s9, %s2168_s9, %s2169_s10  }
  0x33   :  { %2160 = dma.done.wait [#allocation5], 512  }
  0x34   :  { %2161 = vsyncadd [#allocation5], 4294966784 }
  0x35   :  { %2162 = dma.done.wait [#allocation8], 26624  }
  0x36   :  { %2163 = vsyncadd [#allocation8], 4294940672  ;;  %v2171_v0 = vmov 0.0   ;;  %v117_v1 = vld [vmem:[#allocation7 + $0x80] sm:$0xff]  ;;  %v118_v2 = vld [vmem:[#allocation7 + $0x88] sm:$0xff]  ;;  %s2172_s26 = smov [#allocation10]  }
  0x37   :  { %65 = vst [vmem:[#allocation2] sm:$0xff] %v2171_v0  ;;  %68 = vst [vmem:[#allocation2 + $0x18] sm:$0x1] %v2171_v0  ;;  %v101_v3 = vld [vmem:[#allocation7] sm:$0xff]  ;;  %v1761_v4 = vpack.c.bf16 %v118_v2, %v117_v1  ;;  %v102_v5 = vld [vmem:[#allocation7 + $0x8] sm:$0xff]  ;;  %s1267_s27 = sshll.u32 %s2172_s26, 4  ;;  %s1268_s27 = int_to_ptr.vmem [resolvable:$true] %s1267_s27 }
  0x38   :  { %69 = vst [vmem:[#allocation2 + $0x20] sm:$0xff] %v2171_v0  ;;  %72 = vst [vmem:[#allocation2 + $0x38] sm:$0x1] %v2171_v0  ;;  %v133_v6 = vld [vmem:[#allocation7 + $0x100] sm:$0xff]  ;;  %v134_v7 = vld [vmem:[#allocation7 + $0x108] sm:$0xff]  ;;  %v1763_v8 = vpack.c.bf16 %v102_v5, %v101_v3  ;;  %s2138_s28 = scalar_lea.vmem %s1268_s27, 512  ;;  %p2143_p11 = scmp.lt.s32.totalorder %s1268_s27, %s1268_s27 }
  0x39   :  { %73 = vst [vmem:[#allocation3] sm:$0xff] %v2171_v0  ;;  %76 = vst [vmem:[#allocation3 + $0x18] sm:$0x1] %v2171_v0  ;;  %v1793_v9 = vpack.c.bf16 %v134_v7, %v133_v6  ;;  %v119_v10 = vld [vmem:[#allocation7 + $0x90] sm:$0xff]  ;;  %v120_v11 = vld [vmem:[#allocation7 + $0x98] sm:$0xff]  ;;  %1762 = vmatprep.subr.bf16.mxu0 %v1761_v4  ;;  %p2139_p10 = scmp.ne.s32.totalorder %s1268_s27, %s2138_s28  ;;  %p2144_p12 = scmp.lt.s32.totalorder %s2138_s28, %s2138_s28 }
  0x3a   :  { %77 = vst [vmem:[#allocation3 + $0x20] sm:$0xff] %v2171_v0  ;;  %80 = vst [vmem:[#allocation3 + $0x38] sm:$0x1] %v2171_v0  ;;  %v103_v12 = vld [vmem:[#allocation7 + $0x10] sm:$0xff]  ;;  %v1765_v13 = vpack.c.bf16 %v120_v11, %v119_v10  ;;  %v104_v14 = vld [vmem:[#allocation7 + $0x18] sm:$0xff]  ;;  %1764 = vmatpush3.bf16.msra.mxu0 %v1763_v8 }
  0x3b   :  { %v135_v15 = vld [vmem:[#allocation7 + $0x110] sm:$0xff]  ;;  %v136_v16 = vld [vmem:[#allocation7 + $0x118] sm:$0xff]  ;;  %1794 = vmatprep.subr.bf16.mxu1 %v1793_v9  ;;  %v1767_v17 = vpack.c.bf16 %v104_v14, %v103_v12  ;;  %v121_v19 = vld [vmem:[#allocation7 + $0xa0] sm:$0xff]  ;;  %p2145_p13 = por %p2144_p12, %p2143_p11 }
  0x3c   :  { %v1797_v18 = vpack.c.bf16 %v136_v16, %v135_v15  ;;  %v122_v20 = vld [vmem:[#allocation7 + $0xa8] sm:$0xff]  ;;  %v105_v21 = vld [vmem:[#allocation7 + $0x20] sm:$0xff]  ;;  %1796 = vmatpush3.bf16.msra.mxu1 %v1793_v9  ;;  %1766 = vmatprep.subr.bf16.mxu0 %v1765_v13  ;;  %v123_v27 = vld [vmem:[#allocation7 + $0xb0] sm:$0xff] }
  0x3d   :  { %v1769_v22 = vpack.c.bf16 %v122_v20, %v121_v19  ;;  %v106_v23 = vld [vmem:[#allocation7 + $0x28] sm:$0xff]  ;;  %v137_v24 = vld [vmem:[#allocation7 + $0x120] sm:$0xff]  ;;  %v124_v28 = vld [vmem:[#allocation7 + $0xb8] sm:$0xff]  ;;  %p2146_p0 = pnand %p2145_p13, %p2139_p10 }
  0x3e   :  { %v138_v25 = vld [vmem:[#allocation7 + $0x128] sm:$0xff]  ;;  %1798 = vmatprep.subr.bf16.mxu1 %v1797_v18  ;;  %v139_v29 = vld [vmem:[#allocation7 + $0x130] sm:$0xff]  ;;  %v140_v30 = vld [vmem:[#allocation7 + $0x138] sm:$0xff]  ;;  %1768 = vmatpush3.bf16.msra.mxu0 %v1767_v17  ;;  %v1771_v31 = vpack.c.bf16 %v106_v23, %v105_v21  ;;  %v1773_v32 = vpack.c.bf16 %v124_v28, %v123_v27 }
  0x3f   :  { %v1801_v26 = vpack.c.bf16 %v138_v25, %v137_v24  ;;  %1770 = vmatprep.subr.bf16.mxu0 %v1769_v22  ;;  %v107_v33 = vld [vmem:[#allocation7 + $0x30] sm:$0xff]  ;;  %v108_v34 = vld [vmem:[#allocation7 + $0x38] sm:$0xff]  ;;  %v1805_v35 = vpack.c.bf16 %v140_v30, %v139_v29  ;;  %v125_v36 = vld [vmem:[#allocation7 + $0xc0] sm:$0xff] }
  0x40   :  { %1800 = vmatpush3.bf16.msra.mxu1 %v1797_v18  ;;  %v126_v37 = vld [vmem:[#allocation7 + $0xc8] sm:$0xff]  ;;  %v141_v38 = vld [vmem:[#allocation7 + $0x140] sm:$0xff]  ;;  %v1775_v40 = vpack.c.bf16 %v108_v34, %v107_v33  ;;  %v127_v45 = vld [vmem:[#allocation7 + $0xd0] sm:$0xff] }
  0x41   :  { %1802 = vmatprep.subr.bf16.mxu1 %v1801_v26  ;;  %v142_v39 = vld [vmem:[#allocation7 + $0x148] sm:$0xff]  ;;  %v1777_v41 = vpack.c.bf16 %v126_v37, %v125_v36  ;;  %v109_v42 = vld [vmem:[#allocation7 + $0x40] sm:$0xff]  ;;  %v128_v46 = vld [vmem:[#allocation7 + $0xd8] sm:$0xff] }
  0x42   :  { %1772 = vmatpush3.bf16.msra.mxu0 %v1771_v31  ;;  %v110_v43 = vld [vmem:[#allocation7 + $0x48] sm:$0xff]  ;;  %v1809_v44 = vpack.c.bf16 %v142_v39, %v141_v38  ;;  %v143_v47 = vld [vmem:[#allocation7 + $0x150] sm:$0xff]  ;;  %v144_v48 = vld [vmem:[#allocation7 + $0x158] sm:$0xff]  ;;  %v1781_v53 = vpack.c.bf16 %v128_v46, %v127_v45 }
  0x43   :  { %1774 = vmatprep.subr.bf16.mxu0 %v1773_v32  ;;  %v1779_v49 = vpack.c.bf16 %v110_v43, %v109_v42  ;;  %v2260_v50 = vld [vmem:[#allocation4] sm:$0xff]  ;;  %v2262_v51 = vld [vmem:[#allocation4 + $0x8] sm:$0xff]  ;;  %v2264_v52 = vld [vmem:[#allocation4 + $0x10] sm:$0xff]  ;;  %v1813_v57 = vpack.c.bf16 %v144_v48, %v143_v47 }
  0x44   :  { %1804 = vmatpush3.bf16.msra.mxu1 %v1801_v26  ;;  %v111_v54 = vld [vmem:[#allocation7 + $0x50] sm:$0xff]  ;;  %v112_v55 = vld [vmem:[#allocation7 + $0x58] sm:$0xff]  ;;  %85 = vst [vmem:[#allocation2 + $0x8] sm:$0xff] %v2260_v50  ;;  %86 = vst [vmem:[#allocation2 + $0x10] sm:$0xff] %v2262_v51  ;;  %213 = vmatprep.mubr.f32.mxu0 %v2260_v50 }
  0x45   :  { %1806 = vmatprep.subr.bf16.mxu1 %v1805_v35  ;;  %87 = vst [vmem:[#allocation2 + $0x28] sm:$0xff] %v2264_v52  ;;  %v2269_v56 = vld [vmem:[#allocation4 + $0x18] sm:$0xff]  ;;  %v129_v58 = vld [vmem:[#allocation7 + $0xe0] sm:$0xff]  ;;  %v130_v59 = vld [vmem:[#allocation7 + $0xe8] sm:$0xff]  ;;  %v1783_v62 = vpack.c.bf16 %v112_v55, %v111_v54 }
  0x46   :  { %1776 = vmatpush3.bf16.msra.mxu0 %v1775_v40  ;;  %88 = vst [vmem:[#allocation2 + $0x30] sm:$0xff] %v2269_v56  ;;  %v145_v60 = vld [vmem:[#allocation7 + $0x160] sm:$0xff]  ;;  %v146_v61 = vld [vmem:[#allocation7 + $0x168] sm:$0xff]  ;;  %v1785_v63 = vpack.c.bf16 %v130_v59, %v129_v58  ;;  %v131_v3 = vld [vmem:[#allocation7 + $0xf0] sm:$0xff] }
  0x47   :  { %1778 = vmatprep.subr.bf16.mxu0 %v1777_v41  ;;  %v113_v0 = vld [vmem:[#allocation7 + $0x60] sm:$0xff]  ;;  %v114_v1 = vld [vmem:[#allocation7 + $0x68] sm:$0xff]  ;;  %v1817_v2 = vpack.c.bf16 %v146_v61, %v145_v60  ;;  %v132_v4 = vld [vmem:[#allocation7 + $0xf8] sm:$0xff] }
  0x48   :  { %1808 = vmatpush3.bf16.msra.mxu1 %v1805_v35  ;;  %v147_v5 = vld [vmem:[#allocation7 + $0x170] sm:$0xff]  ;;  %v148_v6 = vld [vmem:[#allocation7 + $0x178] sm:$0xff]  ;;  %v1787_v7 = vpack.c.bf16 %v114_v1, %v113_v0  ;;  %v1789_v9 = vpack.c.bf16 %v132_v4, %v131_v3  ;;  %v378_v13 = vld [vmem:[#allocation7 + $0x200] sm:$0xff] }
  0x49   :  { %1810 = vmatprep.subr.bf16.mxu1 %v1809_v44  ;;  %v115_v10 = vld [vmem:[#allocation7 + $0x70] sm:$0xff]  ;;  %v116_v11 = vld [vmem:[#allocation7 + $0x78] sm:$0xff]  ;;  %v1821_v12 = vpack.c.bf16 %v148_v6, %v147_v5  ;;  %v379_v14 = vld [vmem:[#allocation7 + $0x208] sm:$0xff] }
  0x4a   :  { %1780 = vmatpush3.bf16.msra.mxu0 %v1779_v49  ;;  %v394_v15 = vld [vmem:[#allocation7 + $0x280] sm:$0xff]  ;;  %v395_v16 = vld [vmem:[#allocation7 + $0x288] sm:$0xff]  ;;  %v1791_v17 = vpack.c.bf16 %v116_v11, %v115_v10  ;;  %v1825_v18 = vpack.c.bf16 %v379_v14, %v378_v13  ;;  %v380_v22 = vld [vmem:[#allocation7 + $0x210] sm:$0xff] }
  0x4b   :  { %1782 = vmatprep.subr.bf16.mxu0 %v1781_v53  ;;  %v97_v8 = vld [vmem:[#allocation2 + $0x9] sm:$0xff]  ;;  %v362_v19 = vld [vmem:[#allocation7 + $0x180] sm:$0xff]  ;;  %v1857_v21 = vpack.c.bf16 %v395_v16, %v394_v15  ;;  %v381_v23 = vld [vmem:[#allocation7 + $0x218] sm:$0xff] }
  0x4c   :  { %1812 = vmatpush3.bf16.msra.mxu1 %v1809_v44  ;;  %1603 = vmatprep.mubr.f32.mxu1 %v97_v8  ;;  %v363_v20 = vld [vmem:[#allocation7 + $0x188] sm:$0xff]  ;;  %v396_v25 = vld [vmem:[#allocation7 + $0x290] sm:$0xff]  ;;  %v397_v26 = vld [vmem:[#allocation7 + $0x298] sm:$0xff]  ;;  %v1829_v30 = vpack.c.bf16 %v381_v23, %v380_v22 }
  0x4d   :  { %1814 = vmatprep.subr.bf16.mxu1 %v1813_v57  ;;  %v89_v24 = vld [vmem:[#allocation2 + $0x7] sm:$0xff]  ;;  %v98_v27 = vld [vmem:[#allocation2 + $0x11] sm:$0xff]  ;;  %v1827_v28 = vpack.c.bf16 %v363_v20, %v362_v19  ;;  %v1861_v35 = vpack.c.bf16 %v397_v26, %v396_v25 }
  0x4e   :  { %1784 = vmatpush3.bf16.msra.mxu0 %v1783_v62  ;;  %v99_v29 = vld [vmem:[#allocation2 + $0x29] sm:$0xff]  ;;  %v365_v32 = vld [vmem:[#allocation7 + $0x198] sm:$0xff]  ;;  %v382_v33 = vld [vmem:[#allocation7 + $0x220] sm:$0xff] }
  0x4f   :  { %1786 = vmatprep.subr.bf16.mxu0 %v1785_v63  ;;  %v364_v31 = vld [vmem:[#allocation7 + $0x190] sm:$0xff]  ;;  %v383_v34 = vld [vmem:[#allocation7 + $0x228] sm:$0xff]  ;;  %v366_v40 = vld [vmem:[#allocation7 + $0x1a0] sm:$0xff] }
  0x50   :  { %1816 = vmatpush3.bf16.msra.mxu1 %v1813_v57  ;;  %v90_v36 = vld [vmem:[#allocation2 + $0xf] sm:$0xff]  ;;  %v1831_v38 = vpack.c.bf16 %v365_v32, %v364_v31  ;;  %v1833_v39 = vpack.c.bf16 %v383_v34, %v382_v33  ;;  %v91_v42 = vld [vmem:[#allocation2 + $0x27] sm:$0xff]  ;;  %v385_v46 = vld [vmem:[#allocation7 + $0x238] sm:$0xff] }
  0x51   :  { %1818 = vmatprep.subr.bf16.mxu1 %v1817_v2  ;;  %v100_v37 = vld [vmem:[#allocation2 + $0x31] sm:$0xff]  ;;  %v367_v41 = vld [vmem:[#allocation7 + $0x1a8] sm:$0xff]  ;;  %v398_v48 = vld [vmem:[#allocation7 + $0x2a0] sm:$0xff] }
  0x52   :  { %1788 = vmatpush3.bf16.msra.mxu0 %v1787_v7  ;;  %v1835_v43 = vpack.c.bf16 %v367_v41, %v366_v40  ;;  %v92_v44 = vld [vmem:[#allocation2 + $0x2f] sm:$0xff]  ;;  %v369_v55 = vld [vmem:[#allocation7 + $0x1b8] sm:$0xff]  ;;  %v386_v58 = vld [vmem:[#allocation7 + $0x240] sm:$0xff] }
  0x53   :  { %1790 = vmatprep.subr.bf16.mxu0 %v1789_v9  ;;  %v384_v45 = vld [vmem:[#allocation7 + $0x230] sm:$0xff]  ;;  %v399_v49 = vld [vmem:[#allocation7 + $0x2a8] sm:$0xff]  ;;  %v401_v62 = vld [vmem:[#allocation7 + $0x2b8] sm:$0xff] }
  0x54   :  { %1820 = vmatpush3.bf16.msra.mxu1 %v1817_v2  ;;  %v1837_v47 = vpack.c.bf16 %v385_v46, %v384_v45  ;;  %v368_v53 = vld [vmem:[#allocation7 + $0x1b0] sm:$0xff]  ;;  %v1865_v54 = vpack.c.bf16 %v399_v49, %v398_v48  ;;  %v387_v59 = vld [vmem:[#allocation7 + $0x248] sm:$0xff]  ;;  %v370_v63 = vld [vmem:[#allocation7 + $0x1c0] sm:$0xff] }
  0x55   :  { %1822 = vmatprep.subr.bf16.mxu1 %v1821_v12  ;;  %v1839_v57 = vpack.c.bf16 %v369_v55, %v368_v53  ;;  %v1841_v60 = vpack.c.bf16 %v387_v59, %v386_v58  ;;  %v400_v61 = vld [vmem:[#allocation7 + $0x2b0] sm:$0xff]  ;;  %v371_v1 = vld [vmem:[#allocation7 + $0x1c8] sm:$0xff]  ;;  %v389_v4 = vld [vmem:[#allocation7 + $0x258] sm:$0xff] }
  0x56   :  { %1792 = vmatpush3.bf16.msra.mxu0 %v1791_v17  ;;  %v1869_v0 = vpack.c.bf16 %v401_v62, %v400_v61  ;;  %v1843_v2 = vpack.c.bf16 %v371_v1, %v370_v63  ;;  %v388_v3 = vld [vmem:[#allocation7 + $0x250] sm:$0xff]  ;;  %v402_v6 = vld [vmem:[#allocation7 + $0x2c0] sm:$0xff]  ;;  %v403_v7 = vld [vmem:[#allocation7 + $0x2c8] sm:$0xff] }
  0x57   :  { %1826 = vmatprep.subr.bf16.mxu0 %v1825_v18  ;;  %v1845_v5 = vpack.c.bf16 %v389_v4, %v388_v3  ;;  %v1873_v8 = vpack.c.bf16 %v403_v7, %v402_v6  ;;  %v372_v9 = vld [vmem:[#allocation7 + $0x1d0] sm:$0xff]  ;;  %v373_v10 = vld [vmem:[#allocation7 + $0x1d8] sm:$0xff]  ;;  %v391_v13 = vld [vmem:[#allocation7 + $0x268] sm:$0xff] }
  0x58   :  { %1824 = vmatpush3.bf16.msra.mxu1 %v1821_v12  ;;  %v1847_v11 = vpack.c.bf16 %v373_v10, %v372_v9  ;;  %v390_v12 = vld [vmem:[#allocation7 + $0x260] sm:$0xff]  ;;  %v404_v15 = vld [vmem:[#allocation7 + $0x2d0] sm:$0xff]  ;;  %v405_v16 = vld [vmem:[#allocation7 + $0x2d8] sm:$0xff] }
  0x59   :  { %1858 = vmatprep.subr.bf16.mxu1 %v1857_v21  ;;  %214 = vmatmul.mubr.f32.vlgmr.msra.gmra.mrb[0].mxu0 %v89_v24  ;;  %v1849_v14 = vpack.c.bf16 %v391_v13, %v390_v12  ;;  %v374_v17 = vld [vmem:[#allocation7 + $0x1e0] sm:$0xff]  ;;  %v1877_v18 = vpack.c.bf16 %v405_v16, %v404_v15  ;;  %v375_v19 = vld [vmem:[#allocation7 + $0x1e8] sm:$0xff]  ;;  %v393_v22 = vld [vmem:[#allocation7 + $0x278] sm:$0xff] }
  0x5a   :  { %218 = vmatprep.mubr.f32.mxu0 %v2262_v51  ;;  %1828 = vmatpush3.bf16.msra.mxu0 %v1827_v28  ;;  %v1851_v20 = vpack.c.bf16 %v375_v19, %v374_v17  ;;  %v406_v24 = vld [vmem:[#allocation7 + $0x2e0] sm:$0xff]  ;;  %v407_v25 = vld [vmem:[#allocation7 + $0x2e8] sm:$0xff]  ;;  %v376_v26 = vld [vmem:[#allocation7 + $0x1f0] sm:$0xff] }
  0x5b   :  { %1604 = vmatmul.mubr.f32.vlgmr.msra.gmra.mrb[0].mxu1 %v98_v27  ;;  %1830 = vmatprep.subr.bf16.mxu0 %v1829_v30  ;;  %v1881_v27 = vpack.c.bf16 %v407_v25, %v406_v24  ;;  %v377_v28 = vld [vmem:[#allocation7 + $0x1f8] sm:$0xff]  ;;  %v408_v30 = vld [vmem:[#allocation7 + $0x2f0] sm:$0xff]  ;;  %v645_v33 = vld [vmem:[#allocation7 + $0x380] sm:$0xff] }
  0x5c   :  { %1606 = vmatprep.mubr.f32.mxu1 %v99_v29  ;;  %1860 = vmatpush3.bf16.msra.mxu1 %v1857_v21  ;;  %v392_v21 = vld [vmem:[#allocation7 + $0x270] sm:$0xff]  ;;  %v1855_v29 = vpack.c.bf16 %v377_v28, %v376_v26  ;;  %v409_v31 = vld [vmem:[#allocation7 + $0x2f8] sm:$0xff]  ;;  %v646_v34 = vld [vmem:[#allocation7 + $0x388] sm:$0xff] }
  0x5d   :  { %219 = vmatmul.mubr.f32.gmra.mrb[2].mxu0 %v90_v36  ;;  %1862 = vmatprep.subr.bf16.mxu1 %v1861_v35  ;;  %v1853_v23 = vpack.c.bf16 %v393_v22, %v392_v21  ;;  %v1885_v32 = vpack.c.bf16 %v409_v31, %v408_v30  ;;  %v661_v36 = vld [vmem:[#allocation7 + $0x400] sm:$0xff]  ;;  %v647_v9 = vld [vmem:[#allocation7 + $0x390] sm:$0xff]  ;;  %v648_v10 = vld [vmem:[#allocation7 + $0x398] sm:$0xff] }
  0x5e   :  { %223 = vmatprep.mubr.f32.mxu0 %v2264_v52  ;;  %1832 = vmatpush3.bf16.msra.mxu0 %v1831_v38  ;;  %v629_v7 = vld [vmem:[#allocation7 + $0x300] sm:$0xff]  ;;  %v1893_v16 = vpack.c.bf16 %v648_v10, %v647_v9  ;;  %v632_v19 = vld [vmem:[#allocation7 + $0x318] sm:$0xff]  ;;  %v663_v21 = vld [vmem:[#allocation7 + $0x410] sm:$0xff] }
  0x5f   :  { %1607 = vmatmul.mubr.f32.gmra.mrb[2].mxu1 %v100_v37  ;;  %1834 = vmatprep.subr.bf16.mxu0 %v1833_v39  ;;  %v662_v37 = vld [vmem:[#allocation7 + $0x408] sm:$0xff]  ;;  %v664_v22 = vld [vmem:[#allocation7 + $0x418] sm:$0xff]  ;;  %v657_v9 = vld [vmem:[#allocation7 + $0x3e0] sm:$0xff] }
  0x60   :  { %1864 = vmatpush3.bf16.msra.mxu1 %v1861_v35  ;;  %v1889_v35 = vpack.c.bf16 %v646_v34, %v645_v33  ;;  %v2276_v38 = vpack.c.bf16 %v662_v37, %v661_v36  ;;  %v1925_v28 = vpack.c.bf16 %v664_v22, %v663_v21  ;;  %v649_v33 = vld [vmem:[#allocation7 + $0x3a0] sm:$0xff]  ;;  %v650_v34 = vld [vmem:[#allocation7 + $0x3a8] sm:$0xff]  ;;  %v643_v21 = vld [vmem:[#allocation7 + $0x370] sm:$0xff] }
  0x61   :  { %224 = vmatmul.mubr.f32.gmra.mrb[4].mxu0 %v91_v42  ;;  %1866 = vmatprep.subr.bf16.mxu1 %v1865_v54  ;;  %v633_v36 = vld [vmem:[#allocation7 + $0x320] sm:$0xff]  ;;  %v634_v37 = vld [vmem:[#allocation7 + $0x328] sm:$0xff]  ;;  %v644_v22 = vld [vmem:[#allocation7 + $0x378] sm:$0xff] }
  0x62   :  { %228 = vmatprep.mubr.f32.mxu0 %v2269_v56  ;;  %1836 = vmatpush3.bf16.msra.mxu0 %v1835_v43  ;;  %v658_v10 = vld [vmem:[#allocation7 + $0x3e8] sm:$0xff] }
  0x63   :  { %1838 = vmatprep.subr.bf16.mxu0 %v1837_v47  ;;  %v1281_v47 = vld [vmem:[%s2353_s3] ss:$0 sm:$0xff] }
  0x64   :  { %1868 = vmatpush3.bf16.msra.mxu1 %v1865_v54 }
  0x65   :  { %229 = vmatmul.mubr.f32.gmra.mrb[6].mxu0 %v92_v44  ;;  %1870 = vmatprep.subr.bf16.mxu1 %v1869_v0  ;;  %v1280_v44 = vld [vmem:[%s2352_s2] ss:$0 sm:$0xff] }
  0x66   :  { %1840 = vmatpush3.bf16.msra.mxu0 %v1839_v57 }
  0x67   :  { %1842 = vmatprep.subr.bf16.mxu0 %v1841_v60 }
  0x68   :  { %1872 = vmatpush3.bf16.msra.mxu1 %v1869_v0 }
  0x69   :  { %1874 = vmatprep.subr.bf16.mxu1 %v1873_v8 }
  0x6a   :  { %1844 = vmatpush3.bf16.msra.mxu0 %v1843_v2 }
  0x6b   :  { %1846 = vmatprep.subr.bf16.mxu0 %v1845_v5 }
  0x6c   :  { %1876 = vmatpush3.bf16.msra.mxu1 %v1873_v8  ;;  %v630_v8 = vld [vmem:[#allocation7 + $0x308] sm:$0xff] }
  0x6d   :  { %1878 = vmatprep.subr.bf16.mxu1 %v1877_v18  ;;  %v1891_v13 = vpack.c.bf16 %v630_v8, %v629_v7  ;;  %v672_v7 = vld [vmem:[#allocation7 + $0x458] sm:$0xff] }
  0x6e   :  { %1848 = vmatpush3.bf16.msra.mxu0 %v1847_v11 }
  0x6f   :  { %1850 = vmatprep.subr.bf16.mxu0 %v1849_v14 }
  0x70   :  { %1880 = vmatpush3.bf16.msra.mxu1 %v1877_v18  ;;  %v631_v18 = vld [vmem:[#allocation7 + $0x310] sm:$0xff] }
  0x71   :  { %1882 = vmatprep.subr.bf16.mxu1 %v1881_v27  ;;  %v1895_v24 = vpack.c.bf16 %v632_v19, %v631_v18  ;;  %v659_v18 = vld [vmem:[#allocation7 + $0x3f0] sm:$0xff]  ;;  %v660_v19 = vld [vmem:[#allocation7 + $0x3f8] sm:$0xff] }
  0x72   :  { %1852 = vmatpush3.bf16.msra.mxu0 %v1851_v20 }
  0x73   :  { %1854 = vmatprep.subr.bf16.mxu0 %v1853_v23 }
  0x74   :  { %1884 = vmatpush3.bf16.msra.mxu1 %v1881_v27 }
  0x75   :  { %1886 = vmatprep.subr.bf16.mxu1 %v1885_v32 }
  0x76   :  { %1856 = vmatpush3.bf16.msra.mxu0 %v1855_v29 }
  0x77   :  { %1890 = vmatprep.subr.bf16.mxu0 %v1889_v35  ;;  %v1897_v35 = vpack.c.bf16 %v650_v34, %v649_v33 }
  0x78   :  { %1888 = vmatpush3.bf16.msra.mxu1 %v1885_v32 }
  0x79   :  { %1922 = vmatprep.subr.bf16.mxu1 %v2276_v38 }
 0x12c   :  { %v1327_v39 = vpop.f32.mrb[0].mxu0 }
 0x12d   :  { %v1328_v40 = vpop.f32.mrb[1].mxu0 }
 0x12e   :  { %v1605_v41 = vpop.f32.mrb[0].mxu1  ;;  %v1329_v42 = vadd.f32 %v1328_v40, %v1327_v39  ;;  %v1899_v39 = vpack.c.bf16 %v634_v37, %v633_v36  ;;  %v665_v40 = vld [vmem:[#allocation7 + $0x420] sm:$0xff] }
 0x12f   :  { %v300_v43 = vpop.f32.mrb[1].mxu1 }
 0x130   :  { %v301_v45 = vadd.f32 %v1329_v42, %v300_v43  ;;  %v1330_v46 = vpop.f32.mrb[2].mxu0  ;;  %v651_v42 = vld [vmem:[#allocation7 + $0x3b0] sm:$0xff]  ;;  %v652_v43 = vld [vmem:[#allocation7 + $0x3b8] sm:$0xff] }
 0x131   :  { %v1331_v48 = vpop.f32.mrb[3].mxu0 }
 0x132   :  { %v1608_v49 = vpop.f32.mrb[2].mxu1  ;;  %v326_v53 = vmul.f32 %v1280_v44, %v301_v45  ;;  %v1332_v54 = vadd.f32 %v1331_v48, %v1330_v46  ;;  %v635_v45 = vld [vmem:[#allocation7 + $0x330] sm:$0xff]  ;;  %v636_v46 = vld [vmem:[#allocation7 + $0x338] sm:$0xff] }
 0x133   :  { %v310_v55 = vpop.f32.mrb[3].mxu1  ;;  %v667_v48 = vld [vmem:[#allocation7 + $0x430] sm:$0xff] }
 0x134   :  { %v337_v57 = vadd.f32 %v1281_v47, %v326_v53  ;;  %v306_v58 = vadd.f32 %v1605_v41, %v1332_v54  ;;  %v1333_v59 = vpop.f32.mrb[4].mxu0  ;;  %v653_v54 = vld [vmem:[#allocation7 + $0x3c0] sm:$0xff] }
 0x135   :  { %v1334_v60 = vpop.f32.mrb[5].mxu0 }
 0x136   :  { %v341_v61 = vmax.f32 %v337_v57, 0.0  ;;  %v327_v62 = vmul.f32 %v1280_v44, %v306_v58  ;;  %v1335_v63 = vadd.f32 %v1334_v60, %v1333_v59  ;;  %v637_v58 = vld [vmem:[#allocation7 + $0x340] sm:$0xff]  ;;  %v638_v59 = vld [vmem:[#allocation7 + $0x348] sm:$0xff] }
 0x137   :  { %v1907_v60 = vpack.c.bf16 %v638_v59, %v637_v58 }
 0x138   :  { %345 = vst [vmem:[#allocation3 + $0x8] sm:$0xff] %v341_v61  ;;  %v338_v0 = vadd.f32 %v1281_v47, %v327_v62  ;;  %v311_v1 = vadd.f32 %v1335_v63, %v310_v55  ;;  %v1336_v2 = vpop.f32.mrb[6].mxu0  ;;  %474 = vmatprep.mubr.f32.mxu0 %v341_v61  ;;  %v654_v55 = vld [vmem:[#allocation7 + $0x3c8] sm:$0xff]  ;;  %v669_v61 = vld [vmem:[#allocation7 + $0x440] sm:$0xff] }
 0x139   :  { %v1337_v3 = vpop.f32.mrb[7].mxu0  ;;  %v1905_v57 = vpack.c.bf16 %v654_v55, %v653_v54  ;;  %v670_v62 = vld [vmem:[#allocation7 + $0x448] sm:$0xff] }
 0x13a   :  { %v342_v4 = vmax.f32 %v338_v0, 0.0  ;;  %v328_v5 = vmul.f32 %v1280_v44, %v311_v1  ;;  %v1338_v6 = vadd.f32 %v1337_v3, %v1336_v2  ;;  %v1937_v63 = vpack.c.bf16 %v670_v62, %v669_v61  ;;  %v655_v0 = vld [vmem:[#allocation7 + $0x3d0] sm:$0xff]  ;;  %v656_v1 = vld [vmem:[#allocation7 + $0x3d8] sm:$0xff] }
 0x13b   :  { %v1909_v2 = vpack.c.bf16 %v656_v1, %v655_v0  ;;  %v639_v3 = vld [vmem:[#allocation7 + $0x350] sm:$0xff] }
 0x13c   :  { %346 = vst [vmem:[#allocation3 + $0x10] sm:$0xff] %v342_v4  ;;  %v339_v11 = vadd.f32 %v1281_v47, %v328_v5  ;;  %v316_v12 = vadd.f32 %v1608_v49, %v1338_v6  ;;  %v668_v49 = vld [vmem:[#allocation7 + $0x438] sm:$0xff]  ;;  %v671_v6 = vld [vmem:[#allocation7 + $0x450] sm:$0xff] }
 0x13d   :  { %v1933_v53 = vpack.c.bf16 %v668_v49, %v667_v48  ;;  %v1941_v8 = vpack.c.bf16 %v672_v7, %v671_v6  ;;  %v892_v7 = vld [vmem:[#allocation7 + $0x480] sm:$0xff] }
 0x13e   :  { %v343_v14 = vmax.f32 %v339_v11, 0.0  ;;  %v329_v15 = vmul.f32 %v1280_v44, %v316_v12  ;;  %v1901_v44 = vpack.c.bf16 %v652_v43, %v651_v42  ;;  %v1913_v11 = vpack.c.bf16 %v658_v10, %v657_v9  ;;  %v641_v12 = vld [vmem:[#allocation7 + $0x360] sm:$0xff]  ;;  %v911_v10 = vld [vmem:[#allocation7 + $0x518] sm:$0xff] }
 0x13f   :  { %v349_v17 = vld [vmem:[#allocation3 + $0x7] sm:$0xff] }
 0x140   :  { %347 = vst [vmem:[#allocation3 + $0x28] sm:$0xff] %v343_v14  ;;  %v340_v20 = vadd.f32 %v1281_v47, %v329_v15  ;;  %475 = vmatmul.mubr.f32.vlgmr.msra.gmra.mrb[8].mxu0 %v349_v17  ;;  %v1903_v47 = vpack.c.bf16 %v636_v46, %v635_v45  ;;  %v673_v15 = vld [vmem:[#allocation7 + $0x460] sm:$0xff] }
 0x141   :  { %479 = vmatprep.mubr.f32.mxu0 %v342_v4  ;;  %1892 = vmatpush3.bf16.msra.mxu0 %v1891_v13  ;;  %v640_v4 = vld [vmem:[#allocation7 + $0x358] sm:$0xff]  ;;  %v642_v13 = vld [vmem:[#allocation7 + $0x368] sm:$0xff] }
 0x142   :  { %v344_v23 = vmax.f32 %v340_v20, 0.0  ;;  %1894 = vmatprep.subr.bf16.mxu0 %v1893_v16  ;;  %v1911_v5 = vpack.c.bf16 %v640_v4, %v639_v3  ;;  %v674_v16 = vld [vmem:[#allocation7 + $0x468] sm:$0xff]  ;;  %v1917_v20 = vpack.c.bf16 %v660_v19, %v659_v18  ;;  %v895_v19 = vld [vmem:[#allocation7 + $0x498] sm:$0xff] }
 0x143   :  { %v357_v25 = vld [vmem:[#allocation3 + $0x9] sm:$0xff]  ;;  %v358_v27 = vld [vmem:[#allocation3 + $0x11] sm:$0xff]  ;;  %v1945_v17 = vpack.c.bf16 %v674_v16, %v673_v15 }
 0x144   :  { %v350_v26 = vld [vmem:[#allocation3 + $0xf] sm:$0xff]  ;;  %348 = vst [vmem:[#allocation3 + $0x30] sm:$0xff] %v344_v23  ;;  %1641 = vmatprep.mubr.f32.mxu1 %v357_v25  ;;  %v676_v25 = vld [vmem:[#allocation7 + $0x478] sm:$0xff] }
 0x145   :  { %480 = vmatmul.mubr.f32.gmra.mrb[10].mxu0 %v350_v26  ;;  %1642 = vmatmul.mubr.f32.vlgmr.msra.gmra.mrb[4].mxu1 %v358_v27  ;;  %v908_v27 = vld [vmem:[#allocation7 + $0x500] sm:$0xff]  ;;  %v894_v15 = vld [vmem:[#allocation7 + $0x490] sm:$0xff] }
 0x146   :  { %484 = vmatprep.mubr.f32.mxu0 %v343_v14  ;;  %1924 = vmatpush3.bf16.msra.mxu1 %v2276_v38  ;;  %v666_v38 = vld [vmem:[#allocation7 + $0x428] sm:$0xff]  ;;  %v1915_v14 = vpack.c.bf16 %v642_v13, %v641_v12  ;;  %v926_v12 = vld [vmem:[#allocation7 + $0x590] sm:$0xff] }
 0x147   :  { %1896 = vmatpush3.bf16.msra.mxu0 %v1895_v24  ;;  %v351_v29 = vld [vmem:[#allocation3 + $0x27] sm:$0xff]  ;;  %1926 = vmatprep.subr.bf16.mxu1 %v1925_v28  ;;  %v1929_v41 = vpack.c.bf16 %v666_v38, %v665_v40  ;;  %v675_v24 = vld [vmem:[#allocation7 + $0x470] sm:$0xff]  ;;  %v1283_v38 = vld [vmem:[%s2352_s2 + $0x1] ss:$0 sm:$0xff] }
 0x148   :  { %1898 = vmatprep.subr.bf16.mxu0 %v1897_v35  ;;  %v1949_v26 = vpack.c.bf16 %v676_v25, %v675_v24 }
 0x149   :  { %485 = vmatmul.mubr.f32.gmra.mrb[12].mxu0 %v351_v29 }
 0x14a   :  { %489 = vmatprep.mubr.f32.mxu0 %v344_v23  ;;  %1928 = vmatpush3.bf16.msra.mxu1 %v1925_v28  ;;  %v1919_v23 = vpack.c.bf16 %v644_v22, %v643_v21  ;;  %v909_v28 = vld [vmem:[#allocation7 + $0x508] sm:$0xff] }
 0x14b   :  { %v359_v30 = vld [vmem:[#allocation3 + $0x29] sm:$0xff]  ;;  %v360_v32 = vld [vmem:[#allocation3 + $0x31] sm:$0xff]  ;;  %1900 = vmatpush3.bf16.msra.mxu0 %v1899_v39  ;;  %1930 = vmatprep.subr.bf16.mxu1 %v1929_v41  ;;  %v1953_v29 = vpack.c.bf16 %v909_v28, %v908_v27 }
 0x14c   :  { %v352_v31 = vld [vmem:[#allocation3 + $0x2f] sm:$0xff]  ;;  %1644 = vmatprep.mubr.f32.mxu1 %v359_v30  ;;  %1902 = vmatprep.subr.bf16.mxu0 %v1901_v44  ;;  %v924_v30 = vld [vmem:[#allocation7 + $0x580] sm:$0xff] }
 0x14d   :  { %490 = vmatmul.mubr.f32.gmra.mrb[14].mxu0 %v352_v31  ;;  %1645 = vmatmul.mubr.f32.gmra.mrb[6].mxu1 %v360_v32  ;;  %v925_v31 = vld [vmem:[#allocation7 + $0x588] sm:$0xff]  ;;  %v1285_v44 = vld [vmem:[%s2353_s3 + $0x1] ss:$0 sm:$0xff] }
 0x14e   :  { %1932 = vmatpush3.bf16.msra.mxu1 %v1929_v41  ;;  %v2286_v32 = vpack.c.bf16 %v925_v31, %v924_v30  ;;  %v897_v27 = vld [vmem:[#allocation7 + $0x4a8] sm:$0xff] }
 0x14f   :  { %1904 = vmatpush3.bf16.msra.mxu0 %v1903_v47  ;;  %1934 = vmatprep.subr.bf16.mxu1 %v1933_v53 }
 0x150   :  { %1906 = vmatprep.subr.bf16.mxu0 %v1905_v57 }
 0x152   :  { %1936 = vmatpush3.bf16.msra.mxu1 %v1933_v53 }
 0x153   :  { %1908 = vmatpush3.bf16.msra.mxu0 %v1907_v60  ;;  %1938 = vmatprep.subr.bf16.mxu1 %v1937_v63 }
 0x154   :  { %1910 = vmatprep.subr.bf16.mxu0 %v1909_v2 }
 0x156   :  { %1940 = vmatpush3.bf16.msra.mxu1 %v1937_v63 }
 0x157   :  { %1912 = vmatpush3.bf16.msra.mxu0 %v1911_v5  ;;  %1942 = vmatprep.subr.bf16.mxu1 %v1941_v8 }
 0x158   :  { %1914 = vmatprep.subr.bf16.mxu0 %v1913_v11 }
 0x15a   :  { %1944 = vmatpush3.bf16.msra.mxu1 %v1941_v8  ;;  %v893_v8 = vld [vmem:[#allocation7 + $0x488] sm:$0xff] }
 0x15b   :  { %1916 = vmatpush3.bf16.msra.mxu0 %v1915_v14  ;;  %1946 = vmatprep.subr.bf16.mxu1 %v1945_v17  ;;  %v1955_v14 = vpack.c.bf16 %v893_v8, %v892_v7  ;;  %v904_v7 = vld [vmem:[#allocation7 + $0x4e0] sm:$0xff] }
 0x15c   :  { %1918 = vmatprep.subr.bf16.mxu0 %v1917_v20  ;;  %v912_v20 = vld [vmem:[#allocation7 + $0x520] sm:$0xff] }
 0x15e   :  { %1948 = vmatpush3.bf16.msra.mxu1 %v1945_v17 }
 0x15f   :  { %1920 = vmatpush3.bf16.msra.mxu0 %v1919_v23  ;;  %1950 = vmatprep.subr.bf16.mxu1 %v1949_v26  ;;  %v913_v23 = vld [vmem:[#allocation7 + $0x528] sm:$0xff] }
 0x160   :  { %1954 = vmatprep.subr.bf16.mxu0 %v1953_v29  ;;  %v1961_v25 = vpack.c.bf16 %v913_v23, %v912_v20  ;;  %v938_v20 = vld [vmem:[#allocation7 + $0x5f0] sm:$0xff]  ;;  %v1150_v23 = vld [vmem:[#allocation9] sm:$0xff] }
 0x162   :  { %1952 = vmatpush3.bf16.msra.mxu1 %v1949_v26  ;;  %v896_v26 = vld [vmem:[#allocation7 + $0x4a0] sm:$0xff] }
 0x163   :  { %1986 = vmatprep.subr.bf16.mxu1 %v2286_v32  ;;  %v1963_v28 = vpack.c.bf16 %v897_v27, %v896_v26 }
 0x213   :  { %v1391_v33 = vpop.f32.mrb[8].mxu0 }
 0x214   :  { %v1392_v34 = vpop.f32.mrb[9].mxu0 }
 0x215   :  { %v1393_v35 = vadd.f32 %v1392_v34, %v1391_v33  ;;  %v914_v33 = vld [vmem:[#allocation7 + $0x530] sm:$0xff]  ;;  %v915_v34 = vld [vmem:[#allocation7 + $0x538] sm:$0xff] }
 0x218   :  { %v1394_v36 = vpop.f32.mrb[10].mxu0  ;;  %v1643_v37 = vpop.f32.mrb[4].mxu1 }
 0x219   :  { %v1395_v39 = vpop.f32.mrb[11].mxu0  ;;  %v561_v41 = vpop.f32.mrb[5].mxu1 }
 0x21a   :  { %v1396_v40 = vadd.f32 %v1395_v39, %v1394_v36  ;;  %v562_v42 = vadd.f32 %v1393_v35, %v561_v41  ;;  %v1965_v35 = vpack.c.bf16 %v915_v34, %v914_v33  ;;  %v928_v36 = vld [vmem:[#allocation7 + $0x5a0] sm:$0xff]  ;;  %v898_v39 = vld [vmem:[#allocation7 + $0x4b0] sm:$0xff] }
 0x21c   :  { %v567_v43 = vadd.f32 %v1643_v37, %v1396_v40  ;;  %v1397_v45 = vpop.f32.mrb[12].mxu0  ;;  %v588_v46 = vmul.f32 %v1283_v38, %v562_v42  ;;  %v929_v37 = vld [vmem:[#allocation7 + $0x5a8] sm:$0xff]  ;;  %v916_v42 = vld [vmem:[#allocation7 + $0x540] sm:$0xff] }
 0x21d   :  { %v1398_v47 = vpop.f32.mrb[13].mxu0  ;;  %v1993_v40 = vpack.c.bf16 %v929_v37, %v928_v36 }
 0x21e   :  { %v589_v48 = vmul.f32 %v1283_v38, %v567_v43  ;;  %v1399_v49 = vadd.f32 %v1398_v47, %v1397_v45  ;;  %v600_v53 = vadd.f32 %v1285_v44, %v588_v46  ;;  %v917_v43 = vld [vmem:[#allocation7 + $0x548] sm:$0xff]  ;;  %v930_v45 = vld [vmem:[#allocation7 + $0x5b0] sm:$0xff]  ;;  %v931_v46 = vld [vmem:[#allocation7 + $0x5b8] sm:$0xff] }
 0x21f   :  { %v900_v47 = vld [vmem:[#allocation7 + $0x4c0] sm:$0xff] }
 0x220   :  { %v601_v54 = vadd.f32 %v1285_v44, %v589_v48  ;;  %v1400_v55 = vpop.f32.mrb[14].mxu0  ;;  %v604_v57 = vmax.f32 %v600_v53, 0.0  ;;  %v1646_v58 = vpop.f32.mrb[6].mxu1  ;;  %v1997_v48 = vpack.c.bf16 %v931_v46, %v930_v45 }
 0x221   :  { %v1401_v59 = vpop.f32.mrb[15].mxu0  ;;  %v571_v62 = vpop.f32.mrb[7].mxu1 }
 0x222   :  { %v605_v60 = vmax.f32 %v601_v54, 0.0  ;;  %v1402_v61 = vadd.f32 %v1401_v59, %v1400_v55  ;;  %v2296_v63 = vadd.f32 %v604_v57, %v2260_v50  ;;  %v572_v0 = vadd.f32 %v1399_v49, %v571_v62  ;;  %v910_v50 = vld [vmem:[#allocation7 + $0x510] sm:$0xff]  ;;  %v901_v49 = vld [vmem:[#allocation7 + $0x4c8] sm:$0xff]  ;;  %v919_v55 = vld [vmem:[#allocation7 + $0x558] sm:$0xff] }
 0x223   :  { %v1957_v18 = vpack.c.bf16 %v911_v10, %v910_v50  ;;  %v1971_v53 = vpack.c.bf16 %v901_v49, %v900_v47  ;;  %v918_v54 = vld [vmem:[#allocation7 + $0x550] sm:$0xff]  ;;  %v933_v59 = vld [vmem:[#allocation7 + $0x5c8] sm:$0xff]  ;;  %v903_v62 = vld [vmem:[#allocation7 + $0x4d8] sm:$0xff] }
 0x224   :  { %v2299_v1 = vadd.f32 %v605_v60, %v2262_v51  ;;  %v577_v2 = vadd.f32 %v1646_v58, %v1402_v61  ;;  %612 = vst [vmem:[#allocation2 + $0x8] sm:$0xff] %v2296_v63  ;;  %v590_v3 = vmul.f32 %v1283_v38, %v572_v0  ;;  %741 = vmatprep.mubr.f32.mxu0 %v2296_v63  ;;  %v927_v51 = vld [vmem:[#allocation7 + $0x598] sm:$0xff]  ;;  %v932_v58 = vld [vmem:[#allocation7 + $0x5c0] sm:$0xff]  ;;  %v902_v61 = vld [vmem:[#allocation7 + $0x4d0] sm:$0xff] }
 0x225   :  { %v1989_v24 = vpack.c.bf16 %v927_v51, %v926_v12  ;;  %v1973_v57 = vpack.c.bf16 %v919_v55, %v918_v54  ;;  %v2001_v60 = vpack.c.bf16 %v933_v59, %v932_v58  ;;  %v1975_v0 = vpack.c.bf16 %v903_v62, %v902_v61  ;;  %v922_v10 = vld [vmem:[#allocation7 + $0x570] sm:$0xff]  ;;  %v936_v51 = vld [vmem:[#allocation7 + $0x5e0] sm:$0xff] }
 0x226   :  { %613 = vst [vmem:[#allocation2 + $0x10] sm:$0xff] %v2299_v1  ;;  %v591_v4 = vmul.f32 %v1283_v38, %v577_v2  ;;  %v602_v5 = vadd.f32 %v1285_v44, %v590_v3  ;;  %v899_v38 = vld [vmem:[#allocation7 + $0x4b8] sm:$0xff]  ;;  %v920_v2 = vld [vmem:[#allocation7 + $0x560] sm:$0xff]  ;;  %v921_v3 = vld [vmem:[#allocation7 + $0x568] sm:$0xff] }
 0x227   :  { %v1967_v41 = vpack.c.bf16 %v899_v38, %v898_v39  ;;  %v1152_v55 = vld [vmem:[#allocation9 + $0x10] sm:$0xff] }
 0x228   :  { %v603_v6 = vadd.f32 %v1285_v44, %v591_v4  ;;  %v606_v9 = vmax.f32 %v602_v5, 0.0  ;;  %v1969_v44 = vpack.c.bf16 %v917_v43, %v916_v42  ;;  %v1977_v4 = vpack.c.bf16 %v921_v3, %v920_v2  ;;  %v934_v5 = vld [vmem:[#allocation7 + $0x5d0] sm:$0xff] }
 0x22a   :  { %v607_v11 = vmax.f32 %v603_v6, 0.0  ;;  %v2305_v13 = vadd.f32 %v606_v9, %v2264_v52  ;;  %v1959_v52 = vpack.c.bf16 %v895_v19, %v894_v15  ;;  %v935_v6 = vld [vmem:[#allocation7 + $0x5d8] sm:$0xff]  ;;  %v905_v9 = vld [vmem:[#allocation7 + $0x4e8] sm:$0xff]  ;;  %v906_v15 = vld [vmem:[#allocation7 + $0x4f0] sm:$0xff] }
 0x22b   :  { %v616_v17 = vld [vmem:[#allocation2 + $0x7] sm:$0xff]  ;;  %v2005_v8 = vpack.c.bf16 %v935_v6, %v934_v5  ;;  %v1979_v50 = vpack.c.bf16 %v905_v9, %v904_v7 }
 0x22c   :  { %v2308_v16 = vadd.f32 %v607_v11, %v2269_v56  ;;  %614 = vst [vmem:[#allocation2 + $0x28] sm:$0xff] %v2305_v13  ;;  %742 = vmatmul.mubr.f32.vlgmr.msra.gmra.mrb[16].mxu0 %v616_v17  ;;  %v923_v11 = vld [vmem:[#allocation7 + $0x578] sm:$0xff] }
 0x22d   :  { %v624_v21 = vld [vmem:[#allocation2 + $0x9] sm:$0xff]  ;;  %v625_v22 = vld [vmem:[#allocation2 + $0x11] sm:$0xff]  ;;  %746 = vmatprep.mubr.f32.mxu0 %v2299_v1  ;;  %1956 = vmatpush3.bf16.msra.mxu0 %v1955_v14  ;;  %v1981_v12 = vpack.c.bf16 %v923_v11, %v922_v10  ;;  %v1154_v10 = vld [vmem:[#allocation9 + $0x20] sm:$0xff] }
 0x22e   :  { %615 = vst [vmem:[#allocation2 + $0x30] sm:$0xff] %v2308_v16  ;;  %1679 = vmatprep.mubr.f32.mxu1 %v624_v21  ;;  %v617_v56 = vld [vmem:[#allocation2 + $0xf] sm:$0xff]  ;;  %1958 = vmatprep.subr.bf16.mxu0 %v1957_v18  ;;  %v907_v18 = vld [vmem:[#allocation7 + $0x4f8] sm:$0xff] }
 0x22f   :  { %1680 = vmatmul.mubr.f32.vlgmr.msra.gmra.mrb[8].mxu1 %v625_v22  ;;  %v937_v14 = vld [vmem:[#allocation7 + $0x5e8] sm:$0xff]  ;;  %v1983_v19 = vpack.c.bf16 %v907_v18, %v906_v15  ;;  %v939_v21 = vld [vmem:[#allocation7 + $0x5f8] sm:$0xff] }
 0x230   :  { %1988 = vmatpush3.bf16.msra.mxu1 %v2286_v32  ;;  %747 = vmatmul.mubr.f32.gmra.mrb[18].mxu0 %v617_v56  ;;  %v2009_v17 = vpack.c.bf16 %v937_v14, %v936_v51  ;;  %v2013_v22 = vpack.c.bf16 %v939_v21, %v938_v20  ;;  %v1155_v11 = vld [vmem:[#allocation9 + $0x28] sm:$0xff]  ;;  %v1156_v51 = vld [vmem:[#allocation9 + $0x30] sm:$0xff]  ;;  %v1157_v14 = vld [vmem:[#allocation9 + $0x38] sm:$0xff] }
 0x231   :  { %1990 = vmatprep.subr.bf16.mxu1 %v1989_v24  ;;  %751 = vmatprep.mubr.f32.mxu0 %v2305_v13  ;;  %v2029_v15 = vpack.c.bf16 %v1157_v14, %v1156_v51  ;;  %v1159_v18 = vld [vmem:[#allocation9 + $0x48] sm:$0xff]  ;;  %v1160_v20 = vld [vmem:[#allocation9 + $0x50] sm:$0xff]  ;;  %v1161_v21 = vld [vmem:[#allocation9 + $0x58] sm:$0xff] }
 0x232   :  { %1960 = vmatpush3.bf16.msra.mxu0 %v1959_v52 }
 0x233   :  { %v618_v29 = vld [vmem:[#allocation2 + $0x27] sm:$0xff]  ;;  %1962 = vmatprep.subr.bf16.mxu0 %v1961_v25 }
 0x234   :  { %1992 = vmatpush3.bf16.msra.mxu1 %v1989_v24  ;;  %752 = vmatmul.mubr.f32.gmra.mrb[20].mxu0 %v618_v29  ;;  %v1151_v24 = vld [vmem:[#allocation9 + $0x8] sm:$0xff]  ;;  %v1287_v29 = vld [vmem:[%s2352_s2 + $0x2] ss:$0 sm:$0xff] }
 0x235   :  { %v626_v30 = vld [vmem:[#allocation2 + $0x29] sm:$0xff]  ;;  %v627_v31 = vld [vmem:[#allocation2 + $0x31] sm:$0xff]  ;;  %756 = vmatprep.mubr.f32.mxu0 %v2308_v16  ;;  %1994 = vmatprep.subr.bf16.mxu1 %v1993_v40  ;;  %v2017_v52 = vpack.c.bf16 %v1151_v24, %v1150_v23  ;;  %v1162_v23 = vld [vmem:[#allocation9 + $0x60] sm:$0xff] }
 0x236   :  { %1682 = vmatprep.mubr.f32.mxu1 %v626_v30  ;;  %1964 = vmatpush3.bf16.msra.mxu0 %v1963_v28  ;;  %v619_v32 = vld [vmem:[#allocation2 + $0x2f] sm:$0xff] }
 0x237   :  { %1683 = vmatmul.mubr.f32.gmra.mrb[10].mxu1 %v627_v31  ;;  %1966 = vmatprep.subr.bf16.mxu0 %v1965_v35  ;;  %v1163_v24 = vld [vmem:[#allocation9 + $0x68] sm:$0xff] }
 0x238   :  { %757 = vmatmul.mubr.f32.gmra.mrb[22].mxu0 %v619_v32  ;;  %1996 = vmatpush3.bf16.msra.mxu1 %v1993_v40  ;;  %v1289_v32 = vld [vmem:[%s2353_s3 + $0x2] ss:$0 sm:$0xff] }
 0x239   :  { %1998 = vmatprep.subr.bf16.mxu1 %v1997_v48 }
 0x23a   :  { %1968 = vmatpush3.bf16.msra.mxu0 %v1967_v41 }
 0x23b   :  { %1970 = vmatprep.subr.bf16.mxu0 %v1969_v44 }
 0x23c   :  { %2000 = vmatpush3.bf16.msra.mxu1 %v1997_v48 }
 0x23d   :  { %2002 = vmatprep.subr.bf16.mxu1 %v2001_v60 }
 0x23e   :  { %1972 = vmatpush3.bf16.msra.mxu0 %v1971_v53 }
 0x23f   :  { %1974 = vmatprep.subr.bf16.mxu0 %v1973_v57  ;;  %v1153_v57 = vld [vmem:[#allocation9 + $0x18] sm:$0xff] }
 0x240   :  { %2004 = vmatpush3.bf16.msra.mxu1 %v2001_v60  ;;  %v2021_v62 = vpack.c.bf16 %v1153_v57, %v1152_v55 }
 0x241   :  { %2006 = vmatprep.subr.bf16.mxu1 %v2005_v8 }
 0x242   :  { %1976 = vmatpush3.bf16.msra.mxu0 %v1975_v0 }
 0x243   :  { %1978 = vmatprep.subr.bf16.mxu0 %v1977_v4 }
 0x244   :  { %2008 = vmatpush3.bf16.msra.mxu1 %v2005_v8 }
 0x245   :  { %2010 = vmatprep.subr.bf16.mxu1 %v2009_v17 }
 0x246   :  { %1980 = vmatpush3.bf16.msra.mxu0 %v1979_v50 }
 0x247   :  { %1982 = vmatprep.subr.bf16.mxu0 %v1981_v12  ;;  %v2025_v12 = vpack.c.bf16 %v1155_v11, %v1154_v10 }
 0x248   :  { %2012 = vmatpush3.bf16.msra.mxu1 %v2009_v17  ;;  %v1158_v17 = vld [vmem:[#allocation9 + $0x40] sm:$0xff] }
 0x249   :  { %2014 = vmatprep.subr.bf16.mxu1 %v2013_v22 }
 0x24a   :  { %1984 = vmatpush3.bf16.msra.mxu0 %v1983_v19  ;;  %v2033_v19 = vpack.c.bf16 %v1159_v18, %v1158_v17 }
 0x24b   :  { %2018 = vmatprep.subr.bf16.mxu0 %v2017_v52 }
 0x24c   :  { %2016 = vmatpush3.bf16.msra.mxu1 %v2013_v22  ;;  %v2037_v22 = vpack.c.bf16 %v1161_v21, %v1160_v20 }
 0x24d   :  { %2049 = vmatprep.subr.bf16.mxu1 %v2017_v52 }
 0x2ff   :  { %v1455_v56 = vpop.f32.mrb[16].mxu0 }
 0x300   :  { %v1456_v25 = vpop.f32.mrb[17].mxu0 }
 0x301   :  { %v1457_v26 = vadd.f32 %v1456_v25, %v1455_v56  ;;  %v1164_v56 = vld [vmem:[#allocation9 + $0x70] sm:$0xff]  ;;  %v1165_v25 = vld [vmem:[#allocation9 + $0x78] sm:$0xff] }
 0x302   :  { %v1681_v27 = vpop.f32.mrb[8].mxu1 }
 0x303   :  { %v828_v28 = vpop.f32.mrb[9].mxu1  ;;  %v1458_v31 = vpop.f32.mrb[18].mxu0 }
 0x304   :  { %v829_v30 = vadd.f32 %v1457_v26, %v828_v28  ;;  %v1459_v33 = vpop.f32.mrb[19].mxu0  ;;  %v2045_v26 = vpack.c.bf16 %v1165_v25, %v1164_v56 }
 0x305   :  { %v1460_v35 = vadd.f32 %v1459_v33, %v1458_v31 }
 0x306   :  { %v855_v34 = vmul.f32 %v1287_v29, %v829_v30 }
 0x307   :  { %v834_v37 = vadd.f32 %v1681_v27, %v1460_v35  ;;  %v1461_v39 = vpop.f32.mrb[20].mxu0 }
 0x308   :  { %v867_v36 = vadd.f32 %v1289_v32, %v855_v34  ;;  %v1462_v40 = vpop.f32.mrb[21].mxu0  ;;  %v1291_v34 = vld [vmem:[%s2352_s2 + $0x3] ss:$0 sm:$0xff] }
 0x309   :  { %v856_v41 = vmul.f32 %v1287_v29, %v834_v37  ;;  %v1463_v42 = vadd.f32 %v1462_v40, %v1461_v39  ;;  %v1293_v39 = vld [vmem:[%s2353_s3 + $0x3] ss:$0 sm:$0xff] }
 0x30a   :  { %v871_v38 = vmax.f32 %v867_v36, 0.0  ;;  %v1684_v43 = vpop.f32.mrb[10].mxu1 }
 0x30b   :  { %v838_v44 = vpop.f32.mrb[11].mxu1  ;;  %v868_v45 = vadd.f32 %v1289_v32, %v856_v41  ;;  %v1464_v47 = vpop.f32.mrb[22].mxu0 }
 0x30c   :  { %875 = vst [vmem:[#allocation3 + $0x8] sm:$0xff] %v871_v38  ;;  %v839_v46 = vadd.f32 %v1463_v42, %v838_v44  ;;  %1004 = vmatprep.mubr.f32.mxu0 %v871_v38  ;;  %v1465_v48 = vpop.f32.mrb[23].mxu0 }
 0x30d   :  { %v872_v49 = vmax.f32 %v868_v45, 0.0  ;;  %v1466_v54 = vadd.f32 %v1465_v48, %v1464_v47 }
 0x30e   :  { %v857_v53 = vmul.f32 %v1287_v29, %v839_v46 }
 0x30f   :  { %876 = vst [vmem:[#allocation3 + $0x10] sm:$0xff] %v872_v49  ;;  %v844_v59 = vadd.f32 %v1684_v43, %v1466_v54 }
 0x310   :  { %v869_v58 = vadd.f32 %v1289_v32, %v857_v53 }
 0x311   :  { %v858_v61 = vmul.f32 %v1287_v29, %v844_v59 }
 0x312   :  { %v873_v60 = vmax.f32 %v869_v58, 0.0 }
 0x313   :  { %v879_v0 = vld [vmem:[#allocation3 + $0x7] sm:$0xff]  ;;  %v870_v2 = vadd.f32 %v1289_v32, %v858_v61 }
 0x314   :  { %877 = vst [vmem:[#allocation3 + $0x28] sm:$0xff] %v873_v60  ;;  %1005 = vmatmul.mubr.f32.vlgmr.msra.gmra.mrb[24].mxu0 %v879_v0 }
 0x315   :  { %1009 = vmatprep.mubr.f32.mxu0 %v872_v49  ;;  %2020 = vmatpush3.bf16.msra.mxu0 %v2017_v52  ;;  %v874_v3 = vmax.f32 %v870_v2, 0.0 }
 0x316   :  { %2022 = vmatprep.subr.bf16.mxu0 %v2021_v62  ;;  %v887_v4 = vld [vmem:[#allocation3 + $0x9] sm:$0xff]  ;;  %v888_v6 = vld [vmem:[#allocation3 + $0x11] sm:$0xff] }
 0x317   :  { %v880_v5 = vld [vmem:[#allocation3 + $0xf] sm:$0xff]  ;;  %878 = vst [vmem:[#allocation3 + $0x30] sm:$0xff] %v874_v3  ;;  %1717 = vmatprep.mubr.f32.mxu1 %v887_v4 }
 0x318   :  { %1010 = vmatmul.mubr.f32.gmra.mrb[26].mxu0 %v880_v5  ;;  %1718 = vmatmul.mubr.f32.vlgmr.msra.gmra.mrb[12].mxu1 %v888_v6 }
 0x319   :  { %1014 = vmatprep.mubr.f32.mxu0 %v873_v60  ;;  %2024 = vmatpush3.bf16.msra.mxu0 %v2021_v62 }
 0x31a   :  { %2057 = vmatpush3.bf16.msra.mxu1 %v2017_v52  ;;  %2026 = vmatprep.subr.bf16.mxu0 %v2025_v12  ;;  %v2041_v52 = vpack.c.bf16 %v1163_v24, %v1162_v23 }
 0x31b   :  { %v881_v7 = vld [vmem:[#allocation3 + $0x27] sm:$0xff]  ;;  %2050 = vmatprep.subr.bf16.mxu1 %v2021_v62 }
 0x31c   :  { %1015 = vmatmul.mubr.f32.gmra.mrb[28].mxu0 %v881_v7 }
 0x31d   :  { %1019 = vmatprep.mubr.f32.mxu0 %v874_v3  ;;  %2028 = vmatpush3.bf16.msra.mxu0 %v2025_v12 }
 0x31e   :  { %2058 = vmatpush3.bf16.msra.mxu1 %v2021_v62  ;;  %v889_v8 = vld [vmem:[#allocation3 + $0x29] sm:$0xff]  ;;  %v890_v50 = vld [vmem:[#allocation3 + $0x31] sm:$0xff]  ;;  %2030 = vmatprep.subr.bf16.mxu0 %v2029_v15 }
 0x31f   :  { %v882_v9 = vld [vmem:[#allocation3 + $0x2f] sm:$0xff]  ;;  %1720 = vmatprep.mubr.f32.mxu1 %v889_v8  ;;  %2051 = vmatprep.subr.bf16.mxu1 %v2025_v12 }
 0x320   :  { %1020 = vmatmul.mubr.f32.gmra.mrb[30].mxu0 %v882_v9  ;;  %1721 = vmatmul.mubr.f32.gmra.mrb[14].mxu1 %v890_v50 }
 0x321   :  { %2032 = vmatpush3.bf16.msra.mxu0 %v2029_v15 }
 0x322   :  { %2059 = vmatpush3.bf16.msra.mxu1 %v2025_v12  ;;  %2034 = vmatprep.subr.bf16.mxu0 %v2033_v19 }
 0x323   :  { %2052 = vmatprep.subr.bf16.mxu1 %v2029_v15 }
 0x325   :  { %2036 = vmatpush3.bf16.msra.mxu0 %v2033_v19 }
 0x326   :  { %2060 = vmatpush3.bf16.msra.mxu1 %v2029_v15  ;;  %2038 = vmatprep.subr.bf16.mxu0 %v2037_v22 }
 0x327   :  { %2053 = vmatprep.subr.bf16.mxu1 %v2033_v19 }
 0x329   :  { %2040 = vmatpush3.bf16.msra.mxu0 %v2037_v22 }
 0x32a   :  { %2061 = vmatpush3.bf16.msra.mxu1 %v2033_v19  ;;  %2042 = vmatprep.subr.bf16.mxu0 %v2041_v52 }
 0x32b   :  { %2054 = vmatprep.subr.bf16.mxu1 %v2037_v22 }
 0x32d   :  { %2044 = vmatpush3.bf16.msra.mxu0 %v2041_v52 }
 0x32e   :  { %2062 = vmatpush3.bf16.msra.mxu1 %v2037_v22  ;;  %2046 = vmatprep.subr.bf16.mxu0 %v2045_v26 }
 0x32f   :  { %2055 = vmatprep.subr.bf16.mxu1 %v2041_v52 }
 0x331   :  { %2048 = vmatpush3.bf16.msra.mxu0 %v2045_v26 }
 0x332   :  { %2063 = vmatpush3.bf16.msra.mxu1 %v2041_v52 }
 0x333   :  { %2056 = vmatprep.subr.bf16.mxu1 %v2045_v26 }
 0x336   :  { %2064 = vmatpush3.bf16.msra.mxu1 %v2045_v26 }
 0x3e7   :  { %v1519_v27 = vpop.f32.mrb[24].mxu0 }
 0x3e8   :  { %v1520_v28 = vpop.f32.mrb[25].mxu0 }
 0x3e9   :  { %v1521_v29 = vadd.f32 %v1520_v28, %v1519_v27 }
 0x3eb   :  { %v1522_v30 = vpop.f32.mrb[26].mxu0  ;;  %v1719_v31 = vpop.f32.mrb[12].mxu1 }
 0x3ec   :  { %v1523_v32 = vpop.f32.mrb[27].mxu0  ;;  %v1091_v35 = vpop.f32.mrb[13].mxu1 }
 0x3ed   :  { %v1524_v33 = vadd.f32 %v1523_v32, %v1522_v30  ;;  %v1092_v36 = vadd.f32 %v1521_v29, %v1091_v35 }
 0x3ef   :  { %v1097_v37 = vadd.f32 %v1719_v31, %v1524_v33  ;;  %v1525_v40 = vpop.f32.mrb[28].mxu0  ;;  %v1118_v38 = vmul.f32 %v1291_v34, %v1092_v36 }
 0x3f0   :  { %v1526_v41 = vpop.f32.mrb[29].mxu0 }
 0x3f1   :  { %v1119_v42 = vmul.f32 %v1291_v34, %v1097_v37  ;;  %v1527_v43 = vadd.f32 %v1526_v41, %v1525_v40  ;;  %v1130_v44 = vadd.f32 %v1293_v39, %v1118_v38 }
 0x3f3   :  { %v1131_v45 = vadd.f32 %v1293_v39, %v1119_v42  ;;  %v1528_v46 = vpop.f32.mrb[30].mxu0  ;;  %v1134_v47 = vmax.f32 %v1130_v44, 0.0  ;;  %v1722_v48 = vpop.f32.mrb[14].mxu1 }
 0x3f4   :  { %v1529_v49 = vpop.f32.mrb[31].mxu0  ;;  %v1101_v55 = vpop.f32.mrb[15].mxu1 }
 0x3f5   :  { %v1135_v53 = vmax.f32 %v1131_v45, 0.0  ;;  %v1530_v54 = vadd.f32 %v1529_v49, %v1528_v46  ;;  %v1138_v57 = vadd.f32 %v1134_v47, %v2296_v63  ;;  %v1102_v58 = vadd.f32 %v1527_v43, %v1101_v55  ;;  %v1294_v63 = vld [vmem:[%s2355_s5] ss:$0 sm:$0xff] }
 0x3f7   :  { %v1139_v59 = vadd.f32 %v1135_v53, %v2299_v1  ;;  %v1107_v60 = vadd.f32 %v1722_v48, %v1530_v54  ;;  %1142 = vst [vmem:[#allocation2 + $0x8] sm:$0xff] %v1138_v57  ;;  %v1120_v61 = vmul.f32 %v1291_v34, %v1102_v58  ;;  %1755 = vmatprep.mubr.f32.mxu0 %v1138_v57 }
 0x3f9   :  { %1143 = vst [vmem:[#allocation2 + $0x10] sm:$0xff] %v1139_v59  ;;  %v1121_v62 = vmul.f32 %v1291_v34, %v1107_v60  ;;  %1756 = vmatmul.mubr.f32.vlgmr.msra.gmra.mrb[32].mxu0 %v1139_v59  ;;  %v1132_v0 = vadd.f32 %v1293_v39, %v1120_v61 }
 0x3fb   :  { %v1133_v2 = vadd.f32 %v1293_v39, %v1121_v62  ;;  %v1136_v3 = vmax.f32 %v1132_v0, 0.0 }
 0x3fd   :  { %v1137_v4 = vmax.f32 %v1133_v2, 0.0  ;;  %v1140_v5 = vadd.f32 %v1136_v3, %v2305_v13 }
 0x3ff   :  { %v1141_v6 = vadd.f32 %v1137_v4, %v2308_v16  ;;  %1144 = vst [vmem:[#allocation2 + $0x28] sm:$0xff] %v1140_v5  ;;  %1758 = vmatprep.mubr.f32.mxu1 %v1140_v5 }
 0x401   :  { %1145 = vst [vmem:[#allocation2 + $0x30] sm:$0xff] %v1141_v6  ;;  %1759 = vmatmul.mubr.f32.vlgmr.msra.gmra.mrb[16].mxu1 %v1141_v6 }
 0x4cc   :  { %v1757_v1 = vpop.f32.mrb[32].mxu0 }
 0x4cd   :  { %v1245_v7 = vadd.f32 %v1757_v1, %v1294_v63  ;;  %v1239_v8 = vpop.f32.mrb[33].mxu0 }
 0x4ce   :  { %v1240_v9 = vadd.f32 %v1294_v63, %v1239_v8 }
 0x4cf   :  { %1259 = vst [vmem:[#allocation10 + $0x8] sm:$0xff] %v1245_v7 }
 0x4d0   :  { %1258 = vst [vmem:[#allocation10] sm:$0xff] %v1240_v9 }
 0x4d4   :  { %v1760_v50 = vpop.f32.mrb[16].mxu1 }
 0x4d5   :  { %v1255_v13 = vadd.f32 %v1760_v50, %v1294_v63  ;;  %v1249_v10 = vpop.f32.mrb[17].mxu1 }
 0x4d6   :  { %v1250_v16 = vadd.f32 %v1294_v63, %v1249_v10 }
 0x4d7   :  { %1261 = vst [vmem:[#allocation10 + $0x18] sm:$0xff] %v1255_v13 }
 0x4d8   :  { %1260 = vst [vmem:[#allocation10 + $0x10] sm:$0xff] %v1250_v16 }
 0x4d9   :  { %2149 = shalt.err (!%p2146_p0)
}
 0x4da   :  { %s2150_s30 = scalar_lea.hbm %s2356_s6, 512 }
 0x4db   :  { %p2151_p1 = scmp.ne.s32.totalorder %s2356_s6, %s2150_s30  ;;  %p2154_p2 = scmp.lt.u32.totalorder %s2150_s30, %s2356_s6 }
 0x4dd   :  { %p2156_p3 = pnand %p2154_p2, %p2151_p1 }
 0x4df   :  { %2159 = shalt.err (!%p2156_p3)
}
 0x4e0   :  { %1273 = dma.vmem_to_hbm [thread:$0]  %s1268_s27, 512, %s2356_s6, [#allocation6], %s2168_s9, %s2168_s9, %s2169_s10  }
 0x4e1   :  { %2164 = dma.done.wait [#allocation6], 512  }
 0x4e2   :  { %2165 = vsyncadd [#allocation6], 4294966784 }
 0x4e3   :  { %1277 = vsyncpa [#allocation5], 1 }
 0x4e4   :  { %1278 = vsyncpa [#allocation8], 1 }
 0x4e5   :  { %1279 = vsyncpa [#allocation6], 1 }

</bundles_post_ra>
